<compile_context>
chip_gen: v7x
topology: tpu7x:2x2x1
jax: 0.10.0
libtpu: 0.0.40
codegen_flags: <defaults>
</compile_context>

<pallas_src>
import math
import functools

import jax
import jax.numpy as jnp
from jax.experimental import pallas as pl
from jax.experimental.pallas import tpu as pltpu


def _mha_kernel(x_ref, wq_ref, bq_ref, wk_ref, bk_ref, wv_ref, bv_ref,
                wo_ref, bo_ref, out_ref, *rest,
                num_heads, head_dim, blk_b, seq_len, with_attn, approx_recip):
    """One block of batch elements per grid step.

    x_ref:    (blk_b, L, D)
    w*_ref:   (D, D)   pre-transposed (Q pre-scaled by 1/sqrt(head_dim)), compute dtype
    b*_ref:   (1, D)   f32
    out_ref:  (blk_b, L, D) f32
    attn_ref: (blk_b, H*L, L) (only when with_attn)  -> reshaped to (B, H, L, L) in the wrapper
    oh_ref:   (blk_b*L, D) compute-dtype scratch holding all head contexts (lane-concatenated)
    """
    if with_attn:
        attn_ref, oh_ref = rest
    else:
        (oh_ref,) = rest

    D = num_heads * head_dim
    n_rows = blk_b * seq_len
    cd = wq_ref.dtype  # MXU operand dtype (bf16 by default; f32 for the precise path)

    # Flatten (batch-block, seq) into one M dimension so every projection matmul has as many
    # MXU rows as possible.  (L should be a multiple of 8 so this reshape stays layout-free.)
    x2 = x_ref[...].reshape(n_rows, D).astype(cd)

    # Q / K / V projections: one (n_rows, D) x (D, D) matmul each, f32 accumulation.
    # The 1/sqrt(head_dim) attention scale is folded into wq/bq by prepare_params.
    # Cast to the compute dtype ONCE right after the bias add (no per-head casts, half the
    # live Q/K/V footprint when cd = bf16).
    q = (jnp.dot(x2, wq_ref[...], preferred_element_type=jnp.float32) + bq_ref[0]).astype(cd)
    k = (jnp.dot(x2, wk_ref[...], preferred_element_type=jnp.float32) + bk_ref[0]).astype(cd)
    v = (jnp.dot(x2, wv_ref[...], preferred_element_type=jnp.float32) + bv_ref[0]).astype(cd)

    q3 = q.reshape(blk_b, seq_len, D)
    k3 = k.reshape(blk_b, seq_len, D)
    v3 = v.reshape(blk_b, seq_len, D)

    # Static loop over heads (H is small).  Each iteration is batched over the whole
    # batch-block via a single-batch-dim einsum -> one MXU push per head, not per (b, h).
    for h in range(num_heads):
        lo, hi = h * head_dim, (h + 1) * head_dim
        qh = q3[:, :, lo:hi]
        kh = k3[:, :, lo:hi]
        vh = v3[:, :, lo:hi]

        # scores: contraction over head_dim on the LAST axis of both operands
        # (no materialized transpose of K), f32 accumulation.
        s = jnp.einsum("bld,bmd->blm", qh, kh, preferred_element_type=jnp.float32)

        # numerically-stable softmax in f32; normalization via EUP reciprocal when allowed.
        m = jnp.max(s, axis=-1, keepdims=True)
        e = jnp.exp(s - m)
        z = jnp.sum(e, axis=-1, keepdims=True)
        p = e * pl.reciprocal(z, approx=approx_recip)

        if with_attn:
            # Direct per-head store into the output slab (no concatenate, no extra live copies).
            attn_ref[:, h * seq_len:(h + 1) * seq_len, :] = p.astype(attn_ref.dtype)

        oh = jnp.einsum("blm,bmd->bld", p.astype(cd), vh,
                        preferred_element_type=jnp.float32)

        # Lay each head's context into the (n_rows, D) scratch at its lane offset; the output
        # projection below then runs as a single full-depth (K = D) matmul.
        oh_ref[:, lo:hi] = oh.reshape(n_rows, head_dim).astype(cd)

    o = jnp.dot(oh_ref[...], wo_ref[...], preferred_element_type=jnp.float32) + bo_ref[0]
    out_ref[...] = o.reshape(blk_b, seq_len, D).astype(out_ref.dtype)


def prepare_params(params, num_heads, compute_dtype=jnp.bfloat16):
    """One-time parameter prep (call once, NOT per forward):
    - transpose the PyTorch-layout Linear weights so the kernel computes x @ W,
    - fold the 1/sqrt(head_dim) attention scale into the Q projection,
    - cast matmul weights to compute_dtype (bf16 default for MXU throughput; biases stay f32)."""
    D = params["wq"].shape[0]
    head_dim = D // num_heads
    scale = 1.0 / math.sqrt(float(head_dim))
    return {
        "wq": (params["wq"].T * scale).astype(compute_dtype),
        "bq": (params["bq"] * scale).reshape(1, D).astype(jnp.float32),
        "wk": params["wk"].T.astype(compute_dtype),
        "bk": params["bk"].reshape(1, D).astype(jnp.float32),
        "wv": params["wv"].T.astype(compute_dtype),
        "bv": params["bv"].reshape(1, D).astype(jnp.float32),
        "wo": params["wo"].T.astype(compute_dtype),
        "bo": params["bo"].reshape(1, D).astype(jnp.float32),
    }


# ---------------------------------------------------------------------------
# VMEM-aware block-size selection.
# ---------------------------------------------------------------------------

def _vmem_budget_bytes():
    """~75% of the chip's physical VMEM: v7x 64 MiB -> 48 MiB, v5e/v6e 128 MiB -> 96 MiB."""
    cap = 64 * 1024 * 1024  # conservative default (v7x per-TensorCore VMEM)
    try:
        info = pltpu.get_tpu_info()
        cap = int(getattr(info, "vmem_capacity_bytes", cap))
    except Exception:
        pass
    return (cap * 3) // 4


def _block_vmem_bytes(blk_b, L, D, H, cd_bytes, attn_bytes, with_attn, single_buf_w):
    """Approximate per-grid-step VMEM footprint (double-buffered tiles + live temporaries)."""
    n_rows = blk_b * L
    x_tile = 2 * blk_b * L * D * 4                                   # input tile (f32, 2 bufs)
    out_tile = 2 * blk_b * L * D * 4                                 # output tile (f32, 2 bufs)
    attn_tile = (2 * blk_b * H * L * L * attn_bytes) if with_attn else 0
    w_bufs = (1 if single_buf_w else 2) * 4 * D * D * cd_bytes       # 4 grid-invariant weights
    qkv = 3 * n_rows * D * (4 + cd_bytes)                            # f32 matmul out + cd copy
    o_heads = n_rows * D * cd_bytes                                  # head-context scratch
    softmax = 3 * blk_b * L * L * 4                                  # scores/exp/probs (1 head)
    return x_tile + out_tile + attn_tile + w_bufs + qkv + o_heads + softmax


def _pick_block_b(B, L, D, H, cd_bytes, attn_bytes, with_attn, budget):
    """Largest divisor of B that fits the VMEM budget, capped at B//2 so there are always
    >= 2 grid steps on the 'parallel' axis (keeps both v7x TensorCores busy)."""
    cap = max(1, B // 2)
    best = 1
    for bb in range(1, cap + 1):
        if B % bb:
            continue
        # Use the pessimistic (double-buffered weight) estimate so the fallback path also fits.
        if _block_vmem_bytes(bb, L, D, H, cd_bytes, attn_bytes, with_attn,
                             single_buf_w=False) <= budget:
            best = bb
    return best


# Whether this jax version accepts pipeline_mode=pl.Buffered(1) on grid-invariant weights.
_SINGLE_BUFFER_WEIGHTS_OK = True


def multihead_attention(x, prepped, num_heads, *, return_attention=True,
                        attn_dtype=jnp.float32, approx_recip=True):
    """x: (B, L, D) f32; prepped: output of prepare_params.
    Returns outputs (B, L, D) and, when return_attention, attention (B, H, L, L)."""
    global _SINGLE_BUFFER_WEIGHTS_OK

    B, L, D = x.shape
    H = num_heads
    head_dim = D // H

    cd = prepped["wq"].dtype
    cd_bytes = jnp.dtype(cd).itemsize
    attn_bytes = jnp.dtype(attn_dtype).itemsize

    budget = _vmem_budget_bytes()
    blk_b = _pick_block_b(B, L, D, H, cd_bytes, attn_bytes, return_attention, budget)
    est = _block_vmem_bytes(blk_b, L, D, H, cd_bytes, attn_bytes, return_attention,
                            single_buf_w=False)
    vmem_limit = int(min(max(budget, est + (4 << 20)), 128 * 1024 * 1024))
    grid = (B // blk_b,)

    kernel = functools.partial(_mha_kernel, num_heads=H, head_dim=head_dim,
                               blk_b=blk_b, seq_len=L, with_attn=return_attention,
                               approx_recip=approx_recip)

    def _run(single_buffer_weights):
        if single_buffer_weights:
            # Grid-invariant weights/biases: one buffer is enough (index_map never changes).
            w_spec = pl.BlockSpec((D, D), lambda i: (0, 0), pipeline_mode=pl.Buffered(1))
            b_spec = pl.BlockSpec((1, D), lambda i: (0, 0), pipeline_mode=pl.Buffered(1))
        else:
            w_spec = pl.BlockSpec((D, D), lambda i: (0, 0))
            b_spec = pl.BlockSpec((1, D), lambda i: (0, 0))

        if return_attention:
            out_shape = (
                jax.ShapeDtypeStruct((B, L, D), x.dtype),
                jax.ShapeDtypeStruct((B, H * L, L), attn_dtype),
            )
            out_specs = [
                pl.BlockSpec((blk_b, L, D), lambda i: (i, 0, 0)),
                pl.BlockSpec((blk_b, H * L, L), lambda i: (i, 0, 0)),
            ]
        else:
            out_shape = jax.ShapeDtypeStruct((B, L, D), x.dtype)
            out_specs = pl.BlockSpec((blk_b, L, D), lambda i: (i, 0, 0))

        return pl.pallas_call(
            kernel,
            out_shape=out_shape,
            grid_spec=pltpu.PrefetchScalarGridSpec(
                num_scalar_prefetch=0,
                grid=grid,
                in_specs=[
                    pl.BlockSpec((blk_b, L, D), lambda i: (i, 0, 0)),   # x (batch-block tile)
                    w_spec, b_spec,   # q_proj (pre-scaled)
                    w_spec, b_spec,   # k_proj
                    w_spec, b_spec,   # v_proj
                    w_spec, b_spec,   # o_proj
                ],
                out_specs=out_specs,
                scratch_shapes=[pltpu.VMEM((blk_b * L, D), cd)],        # head-context scratch
            ),
            compiler_params=pltpu.CompilerParams(
                dimension_semantics=("parallel",),
                vmem_limit_bytes=vmem_limit,
            ),
        )(x, prepped["wq"], prepped["bq"], prepped["wk"], prepped["bk"],
          prepped["wv"], prepped["bv"], prepped["wo"], prepped["bo"])

    result = None
    if _SINGLE_BUFFER_WEIGHTS_OK:
        try:
            result = _run(single_buffer_weights=True)
        except Exception:
            # pl.Buffered(1) not supported by this jax version -> default double buffering.
            _SINGLE_BUFFER_WEIGHTS_OK = False
    if result is None:
        result = _run(single_buffer_weights=False)

    if return_attention:
        outputs, attn_slab = result
        # Free, metadata-only reshape: (B, H*L, L) -> (B, H, L, L).
        return outputs, attn_slab.reshape(B, H, L, L)
    return result


# ---------------------------------------------------------------------------
# Reference + test harness.
# ---------------------------------------------------------------------------

def _xavier_uniform(key, fan_in, fan_out):
    bound = math.sqrt(6.0 / (fan_in + fan_out))
    return jax.random.uniform(key, (fan_out, fan_in), jnp.float32, -bound, bound)


def _reference(x, params, num_heads):
    """Plain-JAX reference mirroring the PyTorch forward (original param layout)."""
    B, L, D = x.shape
    hd = D // num_heads

    def lin(x, w, b):
        return jnp.einsum("bld,ed->ble", x, w) + b

    Q = lin(x, params["wq"], params["bq"]).reshape(B, L, num_heads, hd).transpose(0, 2, 1, 3)
    K = lin(x, params["wk"], params["bk"]).reshape(B, L, num_heads, hd).transpose(0, 2, 1, 3)
    V = lin(x, params["wv"], params["bv"]).reshape(B, L, num_heads, hd).transpose(0, 2, 1, 3)

    scores = jnp.einsum("bhqd,bhkd->bhqk", Q, K) / jnp.sqrt(jnp.float32(hd))
    attn = jax.nn.softmax(scores, axis=-1)
    out = jnp.einsum("bhqk,bhkd->bhqd", attn, V)
    out = out.transpose(0, 2, 1, 3).reshape(B, L, D)
    out = jnp.einsum("bld,ed->ble", out, params["wo"]) + params["bo"]
    return out, attn


if __name__ == "__main__":
    B, L, D, H = 2, 8, 32, 4

    key = jax.random.PRNGKey(0)
    kx, kq, kk, kv, ko = jax.random.split(key, 5)

    # Deterministic init (xavier_uniform weights, zero bias) as in _reset_parameters.
    params = {
        "wq": _xavier_uniform(kq, D, D), "bq": jnp.zeros((D,), jnp.float32),
        "wk": _xavier_uniform(kk, D, D), "bk": jnp.zeros((D,), jnp.float32),
        "wv": _xavier_uniform(kv, D, D), "bv": jnp.zeros((D,), jnp.float32),
        "wo": _xavier_uniform(ko, D, D), "bo": jnp.zeros((D,), jnp.float32),
    }
    x = jax.random.normal(kx, (B, L, D), jnp.float32)

    ref_out, ref_attn = _reference(x, params, num_heads=H)

    # 1) Precise f32 path (exact reciprocal): strict equivalence with the PyTorch module.
    prepped_f32 = prepare_params(params, num_heads=H, compute_dtype=jnp.float32)
    out32, attn32 = multihead_attention(x, prepped_f32, num_heads=H,
                                        return_attention=True, approx_recip=False)
    out32 = jax.block_until_ready(out32)
    attn32 = jax.block_until_ready(attn32)
    assert out32.shape == (B, L, D)
    assert attn32.shape == (B, H, L, L)
    assert jnp.allclose(out32, ref_out, atol=1e-4, rtol=1e-4)
    assert jnp.allclose(attn32, ref_attn, atol=1e-5, rtol=1e-5)

    # 2) Default fast path: bf16 MXU operands + approx softmax reciprocal (loose tolerances).
    prepped = prepare_params(params, num_heads=H)  # bf16 compute dtype by default
    out, attn = multihead_attention(x, prepped, num_heads=H, return_attention=True)
    out = jax.block_until_ready(out)
    attn = jax.block_until_ready(attn)
    assert out.shape == (B, L, D)
    assert attn.shape == (B, H, L, L)
    assert jnp.allclose(out, ref_out, atol=8e-2, rtol=8e-2)
    assert jnp.allclose(attn, ref_attn, atol=5e-2, rtol=5e-2)
    assert jnp.allclose(jnp.sum(attn, axis=-1), 1.0, atol=1e-2)

    # 3) Attention-free path: slab never allocated or stored; same outputs.
    out_only = multihead_attention(x, prepped, num_heads=H, return_attention=False)
    out_only = jax.block_until_ready(out_only)
    assert out_only.shape == (B, L, D)
    assert jnp.allclose(out_only, out, atol=1e-5, rtol=1e-5)

    print("KERNEL_OK")
</pallas_src>

<mosaic_0001>
module attributes {stable_mosaic.version = 11 : i64} {
  func.func @_mha_kernel(%arg0: i32, %arg1: memref<1x8x32xf32, #tpu.memory_space<vmem>>, %arg2: memref<32x32xf32, #tpu.memory_space<vmem>>, %arg3: memref<1x32xf32, #tpu.memory_space<vmem>>, %arg4: memref<32x32xf32, #tpu.memory_space<vmem>>, %arg5: memref<1x32xf32, #tpu.memory_space<vmem>>, %arg6: memref<32x32xf32, #tpu.memory_space<vmem>>, %arg7: memref<1x32xf32, #tpu.memory_space<vmem>>, %arg8: memref<32x32xf32, #tpu.memory_space<vmem>>, %arg9: memref<1x32xf32, #tpu.memory_space<vmem>>, %arg10: memref<1x8x32xf32, #tpu.memory_space<vmem>>, %arg11: memref<1x32x8xf32, #tpu.memory_space<vmem>>, %arg12: memref<8x32xf32, #tpu.memory_space<vmem>>) attributes {dimension_semantics = [#tpu.dimension_semantics<parallel>], iteration_bounds = array<i64: 2>, scalar_prefetch = 0 : i64, scratch_operands = 1 : i64, tpu.core_type = #tpu.core_type<tc>, window_params = [{transform_indices = @transform_0, window_bounds = array<i64: 1, 8, 32>}, {pipeline_mode = #tpu.pipeline_mode<synchronous>, transform_indices = @transform_1, window_bounds = array<i64: 32, 32>}, {pipeline_mode = #tpu.pipeline_mode<synchronous>, transform_indices = @transform_2, window_bounds = array<i64: 1, 32>}, {pipeline_mode = #tpu.pipeline_mode<synchronous>, transform_indices = @transform_3, window_bounds = array<i64: 32, 32>}, {pipeline_mode = #tpu.pipeline_mode<synchronous>, transform_indices = @transform_4, window_bounds = array<i64: 1, 32>}, {pipeline_mode = #tpu.pipeline_mode<synchronous>, transform_indices = @transform_5, window_bounds = array<i64: 32, 32>}, {pipeline_mode = #tpu.pipeline_mode<synchronous>, transform_indices = @transform_6, window_bounds = array<i64: 1, 32>}, {pipeline_mode = #tpu.pipeline_mode<synchronous>, transform_indices = @transform_7, window_bounds = array<i64: 32, 32>}, {pipeline_mode = #tpu.pipeline_mode<synchronous>, transform_indices = @transform_8, window_bounds = array<i64: 1, 32>}, {transform_indices = @transform_9, window_bounds = array<i64: 1, 8, 32>}, {transform_indices = @transform_10, window_bounds = array<i64: 1, 32, 8>}]} {
    %c0 = arith.constant 0 : index
    %c0_0 = arith.constant 0 : index
    %c0_1 = arith.constant 0 : index
    %0 = vector.load %arg1[%c0, %c0_0, %c0_1] : memref<1x8x32xf32, #tpu.memory_space<vmem>>, vector<1x8x32xf32>
    %1 = vector.shape_cast %0 : vector<1x8x32xf32> to vector<8x32xf32>
    %c0_2 = arith.constant 0 : index
    %c0_3 = arith.constant 0 : index
    %2 = vector.load %arg2[%c0_2, %c0_3] : memref<32x32xf32, #tpu.memory_space<vmem>>, vector<32x32xf32>
    %cst = arith.constant dense<0.000000e+00> : vector<8x32xf32>
    %3 = tpu.matmul %1, %2, %cst {dimension_numbers = #tpu.dot_dimension_numbers<[1], [0], [0], [1], [0, 0, 1, 1], [], []>} : vector<8x32xf32>, vector<32x32xf32>, vector<8x32xf32> -> vector<8x32xf32>
    %c0_4 = arith.constant 0 : index
    %c0_5 = arith.constant 0 : index
    %4 = vector.load %arg3[%c0_4, %c0_5] : memref<1x32xf32, #tpu.memory_space<vmem>>, vector<1x32xf32>
    %5 = vector.shape_cast %4 : vector<1x32xf32> to vector<32xf32>
    %6 = vector.shape_cast %5 : vector<32xf32> to vector<1x32xf32>
    %7 = vector.broadcast %6 : vector<1x32xf32> to vector<8x32xf32>
    %8 = arith.addf %3, %7 : vector<8x32xf32>
    %c0_6 = arith.constant 0 : index
    %c0_7 = arith.constant 0 : index
    %9 = vector.load %arg4[%c0_6, %c0_7] : memref<32x32xf32, #tpu.memory_space<vmem>>, vector<32x32xf32>
    %cst_8 = arith.constant dense<0.000000e+00> : vector<8x32xf32>
    %10 = tpu.matmul %1, %9, %cst_8 {dimension_numbers = #tpu.dot_dimension_numbers<[1], [0], [0], [1], [0, 0, 1, 1], [], []>} : vector<8x32xf32>, vector<32x32xf32>, vector<8x32xf32> -> vector<8x32xf32>
    %c0_9 = arith.constant 0 : index
    %c0_10 = arith.constant 0 : index
    %11 = vector.load %arg5[%c0_9, %c0_10] : memref<1x32xf32, #tpu.memory_space<vmem>>, vector<1x32xf32>
    %12 = vector.shape_cast %11 : vector<1x32xf32> to vector<32xf32>
    %13 = vector.shape_cast %12 : vector<32xf32> to vector<1x32xf32>
    %14 = vector.broadcast %13 : vector<1x32xf32> to vector<8x32xf32>
    %15 = arith.addf %10, %14 : vector<8x32xf32>
    %c0_11 = arith.constant 0 : index
    %c0_12 = arith.constant 0 : index
    %16 = vector.load %arg6[%c0_11, %c0_12] : memref<32x32xf32, #tpu.memory_space<vmem>>, vector<32x32xf32>
    %cst_13 = arith.constant dense<0.000000e+00> : vector<8x32xf32>
    %17 = tpu.matmul %1, %16, %cst_13 {dimension_numbers = #tpu.dot_dimension_numbers<[1], [0], [0], [1], [0, 0, 1, 1], [], []>} : vector<8x32xf32>, vector<32x32xf32>, vector<8x32xf32> -> vector<8x32xf32>
    %c0_14 = arith.constant 0 : index
    %c0_15 = arith.constant 0 : index
    %18 = vector.load %arg7[%c0_14, %c0_15] : memref<1x32xf32, #tpu.memory_space<vmem>>, vector<1x32xf32>
    %19 = vector.shape_cast %18 : vector<1x32xf32> to vector<32xf32>
    %20 = vector.shape_cast %19 : vector<32xf32> to vector<1x32xf32>
    %21 = vector.broadcast %20 : vector<1x32xf32> to vector<8x32xf32>
    %22 = arith.addf %17, %21 : vector<8x32xf32>
    %23 = vector.shape_cast %8 : vector<8x32xf32> to vector<1x8x32xf32>
    %24 = vector.shape_cast %15 : vector<8x32xf32> to vector<1x8x32xf32>
    %25 = vector.shape_cast %22 : vector<8x32xf32> to vector<1x8x32xf32>
    %26 = vector.extract_strided_slice %23 {offsets = [0, 0, 0], sizes = [1, 8, 8], strides = [1, 1, 1]} : vector<1x8x32xf32> to vector<1x8x8xf32>
    %27 = vector.extract_strided_slice %24 {offsets = [0, 0, 0], sizes = [1, 8, 8], strides = [1, 1, 1]} : vector<1x8x32xf32> to vector<1x8x8xf32>
    %28 = vector.extract_strided_slice %25 {offsets = [0, 0, 0], sizes = [1, 8, 8], strides = [1, 1, 1]} : vector<1x8x32xf32> to vector<1x8x8xf32>
    "tpu.trace_start"() <{level = 10 : i32, message = "bld,bmd->blm"}> : () -> ()
    %cst_16 = arith.constant dense<0.000000e+00> : vector<1x8x8xf32>
    %29 = tpu.matmul %26, %27, %cst_16 {dimension_numbers = #tpu.dot_dimension_numbers<[2], [2], [1], [1], [0, 0, 0, 1, 1, 1], [0], [0]>} : vector<1x8x8xf32>, vector<1x8x8xf32>, vector<1x8x8xf32> -> vector<1x8x8xf32>
    "tpu.trace_stop"() : () -> ()
    %cst_17 = arith.constant dense<0xFF800000> : vector<1x8xf32>
    %30 = vector.multi_reduction <maximumf>, %29, %cst_17 [2] : vector<1x8x8xf32> to vector<1x8xf32>
    %31 = vector.shape_cast %30 : vector<1x8xf32> to vector<1x8x1xf32>
    %32 = vector.broadcast %31 : vector<1x8x1xf32> to vector<1x8x8xf32>
    %33 = arith.subf %29, %32 : vector<1x8x8xf32>
    %34 = math.exp %33 : vector<1x8x8xf32>
    %cst_18 = arith.constant dense<0.000000e+00> : vector<1x8xf32>
    %35 = vector.multi_reduction <add>, %34, %cst_18 [2] : vector<1x8x8xf32> to vector<1x8xf32>
    %36 = vector.shape_cast %35 : vector<1x8xf32> to vector<1x8x1xf32>
    %37 = tpu.reciprocal %36 : vector<1x8x1xf32> -> vector<1x8x1xf32>
    %38 = vector.broadcast %37 : vector<1x8x1xf32> to vector<1x8x8xf32>
    %39 = arith.mulf %34, %38 : vector<1x8x8xf32>
    %c0_19 = arith.constant 0 : index
    %c0_20 = arith.constant 0 : index
    %c0_21 = arith.constant 0 : index
    %40 = vector.load %arg11[%c0_19, %c0_20, %c0_21] : memref<1x32x8xf32, #tpu.memory_space<vmem>>, vector<1x8x8xf32>
    tpu.vector_store %arg11[%c0_19, %c0_20, %c0_21], %39 {strides = array<i32>} : memref<1x32x8xf32, #tpu.memory_space<vmem>>, vector<1x8x8xf32>,
    "tpu.trace_start"() <{level = 10 : i32, message = "blm,bmd->bld"}> : () -> ()
    %cst_22 = arith.constant dense<0.000000e+00> : vector<1x8x8xf32>
    %41 = tpu.matmul %39, %28, %cst_22 {dimension_numbers = #tpu.dot_dimension_numbers<[2], [1], [1], [2], [0, 0, 0, 1, 1, 2], [0], [0]>} : vector<1x8x8xf32>, vector<1x8x8xf32>, vector<1x8x8xf32> -> vector<1x8x8xf32>
    "tpu.trace_stop"() : () -> ()
    %42 = vector.shape_cast %41 : vector<1x8x8xf32> to vector<8x8xf32>
    %c0_23 = arith.constant 0 : index
    %c0_24 = arith.constant 0 : index
    %43 = vector.load %arg12[%c0_23, %c0_24] : memref<8x32xf32, #tpu.memory_space<vmem>>, vector<8x8xf32>
    tpu.vector_store %arg12[%c0_23, %c0_24], %42 {strides = array<i32>} : memref<8x32xf32, #tpu.memory_space<vmem>>, vector<8x8xf32>,
    %44 = vector.extract_strided_slice %23 {offsets = [0, 0, 8], sizes = [1, 8, 8], strides = [1, 1, 1]} : vector<1x8x32xf32> to vector<1x8x8xf32>
    %45 = vector.extract_strided_slice %24 {offsets = [0, 0, 8], sizes = [1, 8, 8], strides = [1, 1, 1]} : vector<1x8x32xf32> to vector<1x8x8xf32>
    %46 = vector.extract_strided_slice %25 {offsets = [0, 0, 8], sizes = [1, 8, 8], strides = [1, 1, 1]} : vector<1x8x32xf32> to vector<1x8x8xf32>
    "tpu.trace_start"() <{level = 10 : i32, message = "bld,bmd->blm"}> : () -> ()
    %cst_25 = arith.constant dense<0.000000e+00> : vector<1x8x8xf32>
    %47 = tpu.matmul %44, %45, %cst_25 {dimension_numbers = #tpu.dot_dimension_numbers<[2], [2], [1], [1], [0, 0, 0, 1, 1, 1], [0], [0]>} : vector<1x8x8xf32>, vector<1x8x8xf32>, vector<1x8x8xf32> -> vector<1x8x8xf32>
    "tpu.trace_stop"() : () -> ()
    %cst_26 = arith.constant dense<0xFF800000> : vector<1x8xf32>
    %48 = vector.multi_reduction <maximumf>, %47, %cst_26 [2] : vector<1x8x8xf32> to vector<1x8xf32>
    %49 = vector.shape_cast %48 : vector<1x8xf32> to vector<1x8x1xf32>
    %50 = vector.broadcast %49 : vector<1x8x1xf32> to vector<1x8x8xf32>
    %51 = arith.subf %47, %50 : vector<1x8x8xf32>
    %52 = math.exp %51 : vector<1x8x8xf32>
    %cst_27 = arith.constant dense<0.000000e+00> : vector<1x8xf32>
    %53 = vector.multi_reduction <add>, %52, %cst_27 [2] : vector<1x8x8xf32> to vector<1x8xf32>
    %54 = vector.shape_cast %53 : vector<1x8xf32> to vector<1x8x1xf32>
    %55 = tpu.reciprocal %54 : vector<1x8x1xf32> -> vector<1x8x1xf32>
    %56 = vector.broadcast %55 : vector<1x8x1xf32> to vector<1x8x8xf32>
    %57 = arith.mulf %52, %56 : vector<1x8x8xf32>
    %c0_28 = arith.constant 0 : index
    %c8 = arith.constant 8 : index
    %c0_29 = arith.constant 0 : index
    %58 = vector.load %arg11[%c0_28, %c8, %c0_29] : memref<1x32x8xf32, #tpu.memory_space<vmem>>, vector<1x8x8xf32>
    tpu.vector_store %arg11[%c0_28, %c8, %c0_29], %57 {strides = array<i32>} : memref<1x32x8xf32, #tpu.memory_space<vmem>>, vector<1x8x8xf32>,
    "tpu.trace_start"() <{level = 10 : i32, message = "blm,bmd->bld"}> : () -> ()
    %cst_30 = arith.constant dense<0.000000e+00> : vector<1x8x8xf32>
    %59 = tpu.matmul %57, %46, %cst_30 {dimension_numbers = #tpu.dot_dimension_numbers<[2], [1], [1], [2], [0, 0, 0, 1, 1, 2], [0], [0]>} : vector<1x8x8xf32>, vector<1x8x8xf32>, vector<1x8x8xf32> -> vector<1x8x8xf32>
    "tpu.trace_stop"() : () -> ()
    %60 = vector.shape_cast %59 : vector<1x8x8xf32> to vector<8x8xf32>
    %c0_31 = arith.constant 0 : index
    %c8_32 = arith.constant 8 : index
    %61 = vector.load %arg12[%c0_31, %c8_32] : memref<8x32xf32, #tpu.memory_space<vmem>>, vector<8x8xf32>
    tpu.vector_store %arg12[%c0_31, %c8_32], %60 {strides = array<i32>} : memref<8x32xf32, #tpu.memory_space<vmem>>, vector<8x8xf32>,
    %62 = vector.extract_strided_slice %23 {offsets = [0, 0, 16], sizes = [1, 8, 8], strides = [1, 1, 1]} : vector<1x8x32xf32> to vector<1x8x8xf32>
    %63 = vector.extract_strided_slice %24 {offsets = [0, 0, 16], sizes = [1, 8, 8], strides = [1, 1, 1]} : vector<1x8x32xf32> to vector<1x8x8xf32>
    %64 = vector.extract_strided_slice %25 {offsets = [0, 0, 16], sizes = [1, 8, 8], strides = [1, 1, 1]} : vector<1x8x32xf32> to vector<1x8x8xf32>
    "tpu.trace_start"() <{level = 10 : i32, message = "bld,bmd->blm"}> : () -> ()
    %cst_33 = arith.constant dense<0.000000e+00> : vector<1x8x8xf32>
    %65 = tpu.matmul %62, %63, %cst_33 {dimension_numbers = #tpu.dot_dimension_numbers<[2], [2], [1], [1], [0, 0, 0, 1, 1, 1], [0], [0]>} : vector<1x8x8xf32>, vector<1x8x8xf32>, vector<1x8x8xf32> -> vector<1x8x8xf32>
    "tpu.trace_stop"() : () -> ()
    %cst_34 = arith.constant dense<0xFF800000> : vector<1x8xf32>
    %66 = vector.multi_reduction <maximumf>, %65, %cst_34 [2] : vector<1x8x8xf32> to vector<1x8xf32>
    %67 = vector.shape_cast %66 : vector<1x8xf32> to vector<1x8x1xf32>
    %68 = vector.broadcast %67 : vector<1x8x1xf32> to vector<1x8x8xf32>
    %69 = arith.subf %65, %68 : vector<1x8x8xf32>
    %70 = math.exp %69 : vector<1x8x8xf32>
    %cst_35 = arith.constant dense<0.000000e+00> : vector<1x8xf32>
    %71 = vector.multi_reduction <add>, %70, %cst_35 [2] : vector<1x8x8xf32> to vector<1x8xf32>
    %72 = vector.shape_cast %71 : vector<1x8xf32> to vector<1x8x1xf32>
    %73 = tpu.reciprocal %72 : vector<1x8x1xf32> -> vector<1x8x1xf32>
    %74 = vector.broadcast %73 : vector<1x8x1xf32> to vector<1x8x8xf32>
    %75 = arith.mulf %70, %74 : vector<1x8x8xf32>
    %c0_36 = arith.constant 0 : index
    %c16 = arith.constant 16 : index
    %c0_37 = arith.constant 0 : index
    %76 = vector.load %arg11[%c0_36, %c16, %c0_37] : memref<1x32x8xf32, #tpu.memory_space<vmem>>, vector<1x8x8xf32>
    tpu.vector_store %arg11[%c0_36, %c16, %c0_37], %75 {strides = array<i32>} : memref<1x32x8xf32, #tpu.memory_space<vmem>>, vector<1x8x8xf32>,
    "tpu.trace_start"() <{level = 10 : i32, message = "blm,bmd->bld"}> : () -> ()
    %cst_38 = arith.constant dense<0.000000e+00> : vector<1x8x8xf32>
    %77 = tpu.matmul %75, %64, %cst_38 {dimension_numbers = #tpu.dot_dimension_numbers<[2], [1], [1], [2], [0, 0, 0, 1, 1, 2], [0], [0]>} : vector<1x8x8xf32>, vector<1x8x8xf32>, vector<1x8x8xf32> -> vector<1x8x8xf32>
    "tpu.trace_stop"() : () -> ()
    %78 = vector.shape_cast %77 : vector<1x8x8xf32> to vector<8x8xf32>
    %c0_39 = arith.constant 0 : index
    %c16_40 = arith.constant 16 : index
    %79 = vector.load %arg12[%c0_39, %c16_40] : memref<8x32xf32, #tpu.memory_space<vmem>>, vector<8x8xf32>
    tpu.vector_store %arg12[%c0_39, %c16_40], %78 {strides = array<i32>} : memref<8x32xf32, #tpu.memory_space<vmem>>, vector<8x8xf32>,
    %80 = vector.extract_strided_slice %23 {offsets = [0, 0, 24], sizes = [1, 8, 8], strides = [1, 1, 1]} : vector<1x8x32xf32> to vector<1x8x8xf32>
    %81 = vector.extract_strided_slice %24 {offsets = [0, 0, 24], sizes = [1, 8, 8], strides = [1, 1, 1]} : vector<1x8x32xf32> to vector<1x8x8xf32>
    %82 = vector.extract_strided_slice %25 {offsets = [0, 0, 24], sizes = [1, 8, 8], strides = [1, 1, 1]} : vector<1x8x32xf32> to vector<1x8x8xf32>
    "tpu.trace_start"() <{level = 10 : i32, message = "bld,bmd->blm"}> : () -> ()
    %cst_41 = arith.constant dense<0.000000e+00> : vector<1x8x8xf32>
    %83 = tpu.matmul %80, %81, %cst_41 {dimension_numbers = #tpu.dot_dimension_numbers<[2], [2], [1], [1], [0, 0, 0, 1, 1, 1], [0], [0]>} : vector<1x8x8xf32>, vector<1x8x8xf32>, vector<1x8x8xf32> -> vector<1x8x8xf32>
    "tpu.trace_stop"() : () -> ()
    %cst_42 = arith.constant dense<0xFF800000> : vector<1x8xf32>
    %84 = vector.multi_reduction <maximumf>, %83, %cst_42 [2] : vector<1x8x8xf32> to vector<1x8xf32>
    %85 = vector.shape_cast %84 : vector<1x8xf32> to vector<1x8x1xf32>
    %86 = vector.broadcast %85 : vector<1x8x1xf32> to vector<1x8x8xf32>
    %87 = arith.subf %83, %86 : vector<1x8x8xf32>
    %88 = math.exp %87 : vector<1x8x8xf32>
    %cst_43 = arith.constant dense<0.000000e+00> : vector<1x8xf32>
    %89 = vector.multi_reduction <add>, %88, %cst_43 [2] : vector<1x8x8xf32> to vector<1x8xf32>
    %90 = vector.shape_cast %89 : vector<1x8xf32> to vector<1x8x1xf32>
    %91 = tpu.reciprocal %90 : vector<1x8x1xf32> -> vector<1x8x1xf32>
    %92 = vector.broadcast %91 : vector<1x8x1xf32> to vector<1x8x8xf32>
    %93 = arith.mulf %88, %92 : vector<1x8x8xf32>
    %c0_44 = arith.constant 0 : index
    %c24 = arith.constant 24 : index
    %c0_45 = arith.constant 0 : index
    %94 = vector.load %arg11[%c0_44, %c24, %c0_45] : memref<1x32x8xf32, #tpu.memory_space<vmem>>, vector<1x8x8xf32>
    tpu.vector_store %arg11[%c0_44, %c24, %c0_45], %93 {strides = array<i32>} : memref<1x32x8xf32, #tpu.memory_space<vmem>>, vector<1x8x8xf32>,
    "tpu.trace_start"() <{level = 10 : i32, message = "blm,bmd->bld"}> : () -> ()
    %cst_46 = arith.constant dense<0.000000e+00> : vector<1x8x8xf32>
    %95 = tpu.matmul %93, %82, %cst_46 {dimension_numbers = #tpu.dot_dimension_numbers<[2], [1], [1], [2], [0, 0, 0, 1, 1, 2], [0], [0]>} : vector<1x8x8xf32>, vector<1x8x8xf32>, vector<1x8x8xf32> -> vector<1x8x8xf32>
    "tpu.trace_stop"() : () -> ()
    %96 = vector.shape_cast %95 : vector<1x8x8xf32> to vector<8x8xf32>
    %c0_47 = arith.constant 0 : index
    %c24_48 = arith.constant 24 : index
    %97 = vector.load %arg12[%c0_47, %c24_48] : memref<8x32xf32, #tpu.memory_space<vmem>>, vector<8x8xf32>
    tpu.vector_store %arg12[%c0_47, %c24_48], %96 {strides = array<i32>} : memref<8x32xf32, #tpu.memory_space<vmem>>, vector<8x8xf32>,
    %c0_49 = arith.constant 0 : index
    %c0_50 = arith.constant 0 : index
    %98 = vector.load %arg12[%c0_49, %c0_50] : memref<8x32xf32, #tpu.memory_space<vmem>>, vector<8x32xf32>
    %c0_51 = arith.constant 0 : index
    %c0_52 = arith.constant 0 : index
    %99 = vector.load %arg8[%c0_51, %c0_52] : memref<32x32xf32, #tpu.memory_space<vmem>>, vector<32x32xf32>
    %cst_53 = arith.constant dense<0.000000e+00> : vector<8x32xf32>
    %100 = tpu.matmul %98, %99, %cst_53 {dimension_numbers = #tpu.dot_dimension_numbers<[1], [0], [0], [1], [0, 0, 1, 1], [], []>} : vector<8x32xf32>, vector<32x32xf32>, vector<8x32xf32> -> vector<8x32xf32>
    %c0_54 = arith.constant 0 : index
    %c0_55 = arith.constant 0 : index
    %101 = vector.load %arg9[%c0_54, %c0_55] : memref<1x32xf32, #tpu.memory_space<vmem>>, vector<1x32xf32>
    %102 = vector.shape_cast %101 : vector<1x32xf32> to vector<32xf32>
    %103 = vector.shape_cast %102 : vector<32xf32> to vector<1x32xf32>
    %104 = vector.broadcast %103 : vector<1x32xf32> to vector<8x32xf32>
    %105 = arith.addf %100, %104 : vector<8x32xf32>
    %106 = vector.shape_cast %105 : vector<8x32xf32> to vector<1x8x32xf32>
    %c0_56 = arith.constant 0 : index
    %c0_57 = arith.constant 0 : index
    %c0_58 = arith.constant 0 : index
    %107 = vector.load %arg10[%c0_56, %c0_57, %c0_58] : memref<1x8x32xf32, #tpu.memory_space<vmem>>, vector<1x8x32xf32>
    tpu.vector_store %arg10[%c0_56, %c0_57, %c0_58], %106 {strides = array<i32>} : memref<1x8x32xf32, #tpu.memory_space<vmem>>, vector<1x8x32xf32>,
    return
  }
  func.func @transform_0(%arg0: i32) -> (i32, i32, i32) {
    %c0_i32 = arith.constant 0 : i32
    %c0_i32_0 = arith.constant 0 : i32
    %c0_i32_1 = arith.constant 0 : i32
    return %arg0, %c0_i32, %c0_i32_0 : i32, i32, i32
  }
  func.func @transform_1(%arg0: i32) -> (i32, i32) {
    %c0_i32 = arith.constant 0 : i32
    %c0_i32_0 = arith.constant 0 : i32
    %c0_i32_1 = arith.constant 0 : i32
    return %c0_i32, %c0_i32_0 : i32, i32
  }
  func.func @transform_2(%arg0: i32) -> (i32, i32) {
    %c0_i32 = arith.constant 0 : i32
    %c0_i32_0 = arith.constant 0 : i32
    %c0_i32_1 = arith.constant 0 : i32
    return %c0_i32, %c0_i32_0 : i32, i32
  }
  func.func @transform_3(%arg0: i32) -> (i32, i32) {
    %c0_i32 = arith.constant 0 : i32
    %c0_i32_0 = arith.constant 0 : i32
    %c0_i32_1 = arith.constant 0 : i32
    return %c0_i32, %c0_i32_0 : i32, i32
  }
  func.func @transform_4(%arg0: i32) -> (i32, i32) {
    %c0_i32 = arith.constant 0 : i32
    %c0_i32_0 = arith.constant 0 : i32
    %c0_i32_1 = arith.constant 0 : i32
    return %c0_i32, %c0_i32_0 : i32, i32
  }
  func.func @transform_5(%arg0: i32) -> (i32, i32) {
    %c0_i32 = arith.constant 0 : i32
    %c0_i32_0 = arith.constant 0 : i32
    %c0_i32_1 = arith.constant 0 : i32
    return %c0_i32, %c0_i32_0 : i32, i32
  }
  func.func @transform_6(%arg0: i32) -> (i32, i32) {
    %c0_i32 = arith.constant 0 : i32
    %c0_i32_0 = arith.constant 0 : i32
    %c0_i32_1 = arith.constant 0 : i32
    return %c0_i32, %c0_i32_0 : i32, i32
  }
  func.func @transform_7(%arg0: i32) -> (i32, i32) {
    %c0_i32 = arith.constant 0 : i32
    %c0_i32_0 = arith.constant 0 : i32
    %c0_i32_1 = arith.constant 0 : i32
    return %c0_i32, %c0_i32_0 : i32, i32
  }
  func.func @transform_8(%arg0: i32) -> (i32, i32) {
    %c0_i32 = arith.constant 0 : i32
    %c0_i32_0 = arith.constant 0 : i32
    %c0_i32_1 = arith.constant 0 : i32
    return %c0_i32, %c0_i32_0 : i32, i32
  }
  func.func @transform_9(%arg0: i32) -> (i32, i32, i32) {
    %c0_i32 = arith.constant 0 : i32
    %c0_i32_0 = arith.constant 0 : i32
    %c0_i32_1 = arith.constant 0 : i32
    return %arg0, %c0_i32, %c0_i32_0 : i32, i32, i32
  }
  func.func @transform_10(%arg0: i32) -> (i32, i32, i32) {
    %c0_i32 = arith.constant 0 : i32
    %c0_i32_0 = arith.constant 0 : i32
    %c0_i32_1 = arith.constant 0 : i32
    return %arg0, %c0_i32, %c0_i32_0 : i32, i32, i32
  }
}

module attributes {stable_mosaic.version = 11 : i64} {
  func.func @_mha_kernel(%arg0: i32, %arg1: memref<1x8x32xf32, #tpu.memory_space<vmem>>, %arg2: memref<32x32xf32, #tpu.memory_space<vmem>>, %arg3: memref<1x32xf32, #tpu.memory_space<vmem>>, %arg4: memref<32x32xf32, #tpu.memory_space<vmem>>, %arg5: memref<1x32xf32, #tpu.memory_space<vmem>>, %arg6: memref<32x32xf32, #tpu.memory_space<vmem>>, %arg7: memref<1x32xf32, #tpu.memory_space<vmem>>, %arg8: memref<32x32xf32, #tpu.memory_space<vmem>>, %arg9: memref<1x32xf32, #tpu.memory_space<vmem>>, %arg10: memref<1x8x32xf32, #tpu.memory_space<vmem>>, %arg11: memref<1x32x8xf32, #tpu.memory_space<vmem>>, %arg12: memref<8x32xf32, #tpu.memory_space<vmem>>) attributes {dimension_semantics = [#tpu.dimension_semantics<parallel>], iteration_bounds = array<i64: 2>, scalar_prefetch = 0 : i64, scratch_operands = 1 : i64, tpu.core_type = #tpu.core_type<tc>, window_params = [{transform_indices = @transform_0, window_bounds = array<i64: 1, 8, 32>}, {pipeline_mode = #tpu.pipeline_mode<synchronous>, transform_indices = @transform_1, window_bounds = array<i64: 32, 32>}, {pipeline_mode = #tpu.pipeline_mode<synchronous>, transform_indices = @transform_2, window_bounds = array<i64: 1, 32>}, {pipeline_mode = #tpu.pipeline_mode<synchronous>, transform_indices = @transform_3, window_bounds = array<i64: 32, 32>}, {pipeline_mode = #tpu.pipeline_mode<synchronous>, transform_indices = @transform_4, window_bounds = array<i64: 1, 32>}, {pipeline_mode = #tpu.pipeline_mode<synchronous>, transform_indices = @transform_5, window_bounds = array<i64: 32, 32>}, {pipeline_mode = #tpu.pipeline_mode<synchronous>, transform_indices = @transform_6, window_bounds = array<i64: 1, 32>}, {pipeline_mode = #tpu.pipeline_mode<synchronous>, transform_indices = @transform_7, window_bounds = array<i64: 32, 32>}, {pipeline_mode = #tpu.pipeline_mode<synchronous>, transform_indices = @transform_8, window_bounds = array<i64: 1, 32>}, {transform_indices = @transform_9, window_bounds = array<i64: 1, 8, 32>}, {transform_indices = @transform_10, window_bounds = array<i64: 1, 32, 8>}]} {
    %c0 = arith.constant 0 : index
    %c0_0 = arith.constant 0 : index
    %c0_1 = arith.constant 0 : index
    %0 = vector.load %arg1[%c0, %c0_0, %c0_1] : memref<1x8x32xf32, #tpu.memory_space<vmem>>, vector<1x8x32xf32>
    %1 = vector.shape_cast %0 : vector<1x8x32xf32> to vector<8x32xf32>
    %c0_2 = arith.constant 0 : index
    %c0_3 = arith.constant 0 : index
    %2 = vector.load %arg2[%c0_2, %c0_3] : memref<32x32xf32, #tpu.memory_space<vmem>>, vector<32x32xf32>
    %cst = arith.constant dense<0.000000e+00> : vector<8x32xf32>
    %3 = tpu.matmul %1, %2, %cst {dimension_numbers = #tpu.dot_dimension_numbers<[1], [0], [0], [1], [0, 0, 1, 1], [], []>} : vector<8x32xf32>, vector<32x32xf32>, vector<8x32xf32> -> vector<8x32xf32>
    %c0_4 = arith.constant 0 : index
    %c0_5 = arith.constant 0 : index
    %4 = vector.load %arg3[%c0_4, %c0_5] : memref<1x32xf32, #tpu.memory_space<vmem>>, vector<1x32xf32>
    %5 = vector.shape_cast %4 : vector<1x32xf32> to vector<32xf32>
    %6 = vector.shape_cast %5 : vector<32xf32> to vector<1x32xf32>
    %7 = vector.broadcast %6 : vector<1x32xf32> to vector<8x32xf32>
    %8 = arith.addf %3, %7 : vector<8x32xf32>
    %c0_6 = arith.constant 0 : index
    %c0_7 = arith.constant 0 : index
    %9 = vector.load %arg4[%c0_6, %c0_7] : memref<32x32xf32, #tpu.memory_space<vmem>>, vector<32x32xf32>
    %cst_8 = arith.constant dense<0.000000e+00> : vector<8x32xf32>
    %10 = tpu.matmul %1, %9, %cst_8 {dimension_numbers = #tpu.dot_dimension_numbers<[1], [0], [0], [1], [0, 0, 1, 1], [], []>} : vector<8x32xf32>, vector<32x32xf32>, vector<8x32xf32> -> vector<8x32xf32>
    %c0_9 = arith.constant 0 : index
    %c0_10 = arith.constant 0 : index
    %11 = vector.load %arg5[%c0_9, %c0_10] : memref<1x32xf32, #tpu.memory_space<vmem>>, vector<1x32xf32>
    %12 = vector.shape_cast %11 : vector<1x32xf32> to vector<32xf32>
    %13 = vector.shape_cast %12 : vector<32xf32> to vector<1x32xf32>
    %14 = vector.broadcast %13 : vector<1x32xf32> to vector<8x32xf32>
    %15 = arith.addf %10, %14 : vector<8x32xf32>
    %c0_11 = arith.constant 0 : index
    %c0_12 = arith.constant 0 : index
    %16 = vector.load %arg6[%c0_11, %c0_12] : memref<32x32xf32, #tpu.memory_space<vmem>>, vector<32x32xf32>
    %cst_13 = arith.constant dense<0.000000e+00> : vector<8x32xf32>
    %17 = tpu.matmul %1, %16, %cst_13 {dimension_numbers = #tpu.dot_dimension_numbers<[1], [0], [0], [1], [0, 0, 1, 1], [], []>} : vector<8x32xf32>, vector<32x32xf32>, vector<8x32xf32> -> vector<8x32xf32>
    %c0_14 = arith.constant 0 : index
    %c0_15 = arith.constant 0 : index
    %18 = vector.load %arg7[%c0_14, %c0_15] : memref<1x32xf32, #tpu.memory_space<vmem>>, vector<1x32xf32>
    %19 = vector.shape_cast %18 : vector<1x32xf32> to vector<32xf32>
    %20 = vector.shape_cast %19 : vector<32xf32> to vector<1x32xf32>
    %21 = vector.broadcast %20 : vector<1x32xf32> to vector<8x32xf32>
    %22 = arith.addf %17, %21 : vector<8x32xf32>
    %23 = vector.shape_cast %8 : vector<8x32xf32> to vector<1x8x32xf32>
    %24 = vector.shape_cast %15 : vector<8x32xf32> to vector<1x8x32xf32>
    %25 = vector.shape_cast %22 : vector<8x32xf32> to vector<1x8x32xf32>
    %26 = vector.extract_strided_slice %23 {offsets = [0, 0, 0], sizes = [1, 8, 8], strides = [1, 1, 1]} : vector<1x8x32xf32> to vector<1x8x8xf32>
    %27 = vector.extract_strided_slice %24 {offsets = [0, 0, 0], sizes = [1, 8, 8], strides = [1, 1, 1]} : vector<1x8x32xf32> to vector<1x8x8xf32>
    %28 = vector.extract_strided_slice %25 {offsets = [0, 0, 0], sizes = [1, 8, 8], strides = [1, 1, 1]} : vector<1x8x32xf32> to vector<1x8x8xf32>
    "tpu.trace_start"() <{level = 10 : i32, message = "bld,bmd->blm"}> : () -> ()
    %cst_16 = arith.constant dense<0.000000e+00> : vector<1x8x8xf32>
    %29 = tpu.matmul %26, %27, %cst_16 {dimension_numbers = #tpu.dot_dimension_numbers<[2], [2], [1], [1], [0, 0, 0, 1, 1, 1], [0], [0]>} : vector<1x8x8xf32>, vector<1x8x8xf32>, vector<1x8x8xf32> -> vector<1x8x8xf32>
    "tpu.trace_stop"() : () -> ()
    %cst_17 = arith.constant dense<0xFF800000> : vector<1x8xf32>
    %30 = vector.multi_reduction <maximumf>, %29, %cst_17 [2] : vector<1x8x8xf32> to vector<1x8xf32>
    %31 = vector.shape_cast %30 : vector<1x8xf32> to vector<1x8x1xf32>
    %32 = vector.broadcast %31 : vector<1x8x1xf32> to vector<1x8x8xf32>
    %33 = arith.subf %29, %32 : vector<1x8x8xf32>
    %34 = math.exp %33 : vector<1x8x8xf32>
    %cst_18 = arith.constant dense<0.000000e+00> : vector<1x8xf32>
    %35 = vector.multi_reduction <add>, %34, %cst_18 [2] : vector<1x8x8xf32> to vector<1x8xf32>
    %36 = vector.shape_cast %35 : vector<1x8xf32> to vector<1x8x1xf32>
    %37 = tpu.reciprocal %36 : vector<1x8x1xf32> -> vector<1x8x1xf32>
    %38 = vector.broadcast %37 : vector<1x8x1xf32> to vector<1x8x8xf32>
    %39 = arith.mulf %34, %38 : vector<1x8x8xf32>
    %c0_19 = arith.constant 0 : index
    %c0_20 = arith.constant 0 : index
    %c0_21 = arith.constant 0 : index
    %40 = vector.load %arg11[%c0_19, %c0_20, %c0_21] : memref<1x32x8xf32, #tpu.memory_space<vmem>>, vector<1x8x8xf32>
    tpu.vector_store %arg11[%c0_19, %c0_20, %c0_21], %39 {strides = array<i32>} : memref<1x32x8xf32, #tpu.memory_space<vmem>>, vector<1x8x8xf32>,
    "tpu.trace_start"() <{level = 10 : i32, message = "blm,bmd->bld"}> : () -> ()
    %cst_22 = arith.constant dense<0.000000e+00> : vector<1x8x8xf32>
    %41 = tpu.matmul %39, %28, %cst_22 {dimension_numbers = #tpu.dot_dimension_numbers<[2], [1], [1], [2], [0, 0, 0, 1, 1, 2], [0], [0]>} : vector<1x8x8xf32>, vector<1x8x8xf32>, vector<1x8x8xf32> -> vector<1x8x8xf32>
    "tpu.trace_stop"() : () -> ()
    %42 = vector.shape_cast %41 : vector<1x8x8xf32> to vector<8x8xf32>
    %c0_23 = arith.constant 0 : index
    %c0_24 = arith.constant 0 : index
    %43 = vector.load %arg12[%c0_23, %c0_24] : memref<8x32xf32, #tpu.memory_space<vmem>>, vector<8x8xf32>
    tpu.vector_store %arg12[%c0_23, %c0_24], %42 {strides = array<i32>} : memref<8x32xf32, #tpu.memory_space<vmem>>, vector<8x8xf32>,
    %44 = vector.extract_strided_slice %23 {offsets = [0, 0, 8], sizes = [1, 8, 8], strides = [1, 1, 1]} : vector<1x8x32xf32> to vector<1x8x8xf32>
    %45 = vector.extract_strided_slice %24 {offsets = [0, 0, 8], sizes = [1, 8, 8], strides = [1, 1, 1]} : vector<1x8x32xf32> to vector<1x8x8xf32>
    %46 = vector.extract_strided_slice %25 {offsets = [0, 0, 8], sizes = [1, 8, 8], strides = [1, 1, 1]} : vector<1x8x32xf32> to vector<1x8x8xf32>
    "tpu.trace_start"() <{level = 10 : i32, message = "bld,bmd->blm"}> : () -> ()
    %cst_25 = arith.constant dense<0.000000e+00> : vector<1x8x8xf32>
    %47 = tpu.matmul %44, %45, %cst_25 {dimension_numbers = #tpu.dot_dimension_numbers<[2], [2], [1], [1], [0, 0, 0, 1, 1, 1], [0], [0]>} : vector<1x8x8xf32>, vector<1x8x8xf32>, vector<1x8x8xf32> -> vector<1x8x8xf32>
    "tpu.trace_stop"() : () -> ()
    %cst_26 = arith.constant dense<0xFF800000> : vector<1x8xf32>
    %48 = vector.multi_reduction <maximumf>, %47, %cst_26 [2] : vector<1x8x8xf32> to vector<1x8xf32>
    %49 = vector.shape_cast %48 : vector<1x8xf32> to vector<1x8x1xf32>
    %50 = vector.broadcast %49 : vector<1x8x1xf32> to vector<1x8x8xf32>
    %51 = arith.subf %47, %50 : vector<1x8x8xf32>
    %52 = math.exp %51 : vector<1x8x8xf32>
    %cst_27 = arith.constant dense<0.000000e+00> : vector<1x8xf32>
    %53 = vector.multi_reduction <add>, %52, %cst_27 [2] : vector<1x8x8xf32> to vector<1x8xf32>
    %54 = vector.shape_cast %53 : vector<1x8xf32> to vector<1x8x1xf32>
    %55 = tpu.reciprocal %54 : vector<1x8x1xf32> -> vector<1x8x1xf32>
    %56 = vector.broadcast %55 : vector<1x8x1xf32> to vector<1x8x8xf32>
    %57 = arith.mulf %52, %56 : vector<1x8x8xf32>
    %c0_28 = arith.constant 0 : index
    %c8 = arith.constant 8 : index
    %c0_29 = arith.constant 0 : index
    %58 = vector.load %arg11[%c0_28, %c8, %c0_29] : memref<1x32x8xf32, #tpu.memory_space<vmem>>, vector<1x8x8xf32>
    tpu.vector_store %arg11[%c0_28, %c8, %c0_29], %57 {strides = array<i32>} : memref<1x32x8xf32, #tpu.memory_space<vmem>>, vector<1x8x8xf32>,
    "tpu.trace_start"() <{level = 10 : i32, message = "blm,bmd->bld"}> : () -> ()
    %cst_30 = arith.constant dense<0.000000e+00> : vector<1x8x8xf32>
    %59 = tpu.matmul %57, %46, %cst_30 {dimension_numbers = #tpu.dot_dimension_numbers<[2], [1], [1], [2], [0, 0, 0, 1, 1, 2], [0], [0]>} : vector<1x8x8xf32>, vector<1x8x8xf32>, vector<1x8x8xf32> -> vector<1x8x8xf32>
    "tpu.trace_stop"() : () -> ()
    %60 = vector.shape_cast %59 : vector<1x8x8xf32> to vector<8x8xf32>
    %c0_31 = arith.constant 0 : index
    %c8_32 = arith.constant 8 : index
    %61 = vector.load %arg12[%c0_31, %c8_32] : memref<8x32xf32, #tpu.memory_space<vmem>>, vector<8x8xf32>
    tpu.vector_store %arg12[%c0_31, %c8_32], %60 {strides = array<i32>} : memref<8x32xf32, #tpu.memory_space<vmem>>, vector<8x8xf32>,
    %62 = vector.extract_strided_slice %23 {offsets = [0, 0, 16], sizes = [1, 8, 8], strides = [1, 1, 1]} : vector<1x8x32xf32> to vector<1x8x8xf32>
    %63 = vector.extract_strided_slice %24 {offsets = [0, 0, 16], sizes = [1, 8, 8], strides = [1, 1, 1]} : vector<1x8x32xf32> to vector<1x8x8xf32>
    %64 = vector.extract_strided_slice %25 {offsets = [0, 0, 16], sizes = [1, 8, 8], strides = [1, 1, 1]} : vector<1x8x32xf32> to vector<1x8x8xf32>
    "tpu.trace_start"() <{level = 10 : i32, message = "bld,bmd->blm"}> : () -> ()
    %cst_33 = arith.constant dense<0.000000e+00> : vector<1x8x8xf32>
    %65 = tpu.matmul %62, %63, %cst_33 {dimension_numbers = #tpu.dot_dimension_numbers<[2], [2], [1], [1], [0, 0, 0, 1, 1, 1], [0], [0]>} : vector<1x8x8xf32>, vector<1x8x8xf32>, vector<1x8x8xf32> -> vector<1x8x8xf32>
    "tpu.trace_stop"() : () -> ()
    %cst_34 = arith.constant dense<0xFF800000> : vector<1x8xf32>
    %66 = vector.multi_reduction <maximumf>, %65, %cst_34 [2] : vector<1x8x8xf32> to vector<1x8xf32>
    %67 = vector.shape_cast %66 : vector<1x8xf32> to vector<1x8x1xf32>
    %68 = vector.broadcast %67 : vector<1x8x1xf32> to vector<1x8x8xf32>
    %69 = arith.subf %65, %68 : vector<1x8x8xf32>
    %70 = math.exp %69 : vector<1x8x8xf32>
    %cst_35 = arith.constant dense<0.000000e+00> : vector<1x8xf32>
    %71 = vector.multi_reduction <add>, %70, %cst_35 [2] : vector<1x8x8xf32> to vector<1x8xf32>
    %72 = vector.shape_cast %71 : vector<1x8xf32> to vector<1x8x1xf32>
    %73 = tpu.reciprocal %72 : vector<1x8x1xf32> -> vector<1x8x1xf32>
    %74 = vector.broadcast %73 : vector<1x8x1xf32> to vector<1x8x8xf32>
    %75 = arith.mulf %70, %74 : vector<1x8x8xf32>
    %c0_36 = arith.constant 0 : index
    %c16 = arith.constant 16 : index
    %c0_37 = arith.constant 0 : index
    %76 = vector.load %arg11[%c0_36, %c16, %c0_37] : memref<1x32x8xf32, #tpu.memory_space<vmem>>, vector<1x8x8xf32>
    tpu.vector_store %arg11[%c0_36, %c16, %c0_37], %75 {strides = array<i32>} : memref<1x32x8xf32, #tpu.memory_space<vmem>>, vector<1x8x8xf32>,
    "tpu.trace_start"() <{level = 10 : i32, message = "blm,bmd->bld"}> : () -> ()
    %cst_38 = arith.constant dense<0.000000e+00> : vector<1x8x8xf32>
    %77 = tpu.matmul %75, %64, %cst_38 {dimension_numbers = #tpu.dot_dimension_numbers<[2], [1], [1], [2], [0, 0, 0, 1, 1, 2], [0], [0]>} : vector<1x8x8xf32>, vector<1x8x8xf32>, vector<1x8x8xf32> -> vector<1x8x8xf32>
    "tpu.trace_stop"() : () -> ()
    %78 = vector.shape_cast %77 : vector<1x8x8xf32> to vector<8x8xf32>
    %c0_39 = arith.constant 0 : index
    %c16_40 = arith.constant 16 : index
    %79 = vector.load %arg12[%c0_39, %c16_40] : memref<8x32xf32, #tpu.memory_space<vmem>>, vector<8x8xf32>
    tpu.vector_store %arg12[%c0_39, %c16_40], %78 {strides = array<i32>} : memref<8x32xf32, #tpu.memory_space<vmem>>, vector<8x8xf32>,
    %80 = vector.extract_strided_slice %23 {offsets = [0, 0, 24], sizes = [1, 8, 8], strides = [1, 1, 1]} : vector<1x8x32xf32> to vector<1x8x8xf32>
    %81 = vector.extract_strided_slice %24 {offsets = [0, 0, 24], sizes = [1, 8, 8], strides = [1, 1, 1]} : vector<1x8x32xf32> to vector<1x8x8xf32>
    %82 = vector.extract_strided_slice %25 {offsets = [0, 0, 24], sizes = [1, 8, 8], strides = [1, 1, 1]} : vector<1x8x32xf32> to vector<1x8x8xf32>
    "tpu.trace_start"() <{level = 10 : i32, message = "bld,bmd->blm"}> : () -> ()
    %cst_41 = arith.constant dense<0.000000e+00> : vector<1x8x8xf32>
    %83 = tpu.matmul %80, %81, %cst_41 {dimension_numbers = #tpu.dot_dimension_numbers<[2], [2], [1], [1], [0, 0, 0, 1, 1, 1], [0], [0]>} : vector<1x8x8xf32>, vector<1x8x8xf32>, vector<1x8x8xf32> -> vector<1x8x8xf32>
    "tpu.trace_stop"() : () -> ()
    %cst_42 = arith.constant dense<0xFF800000> : vector<1x8xf32>
    %84 = vector.multi_reduction <maximumf>, %83, %cst_42 [2] : vector<1x8x8xf32> to vector<1x8xf32>
    %85 = vector.shape_cast %84 : vector<1x8xf32> to vector<1x8x1xf32>
    %86 = vector.broadcast %85 : vector<1x8x1xf32> to vector<1x8x8xf32>
    %87 = arith.subf %83, %86 : vector<1x8x8xf32>
    %88 = math.exp %87 : vector<1x8x8xf32>
    %cst_43 = arith.constant dense<0.000000e+00> : vector<1x8xf32>
    %89 = vector.multi_reduction <add>, %88, %cst_43 [2] : vector<1x8x8xf32> to vector<1x8xf32>
    %90 = vector.shape_cast %89 : vector<1x8xf32> to vector<1x8x1xf32>
    %91 = tpu.reciprocal %90 : vector<1x8x1xf32> -> vector<1x8x1xf32>
    %92 = vector.broadcast %91 : vector<1x8x1xf32> to vector<1x8x8xf32>
    %93 = arith.mulf %88, %92 : vector<1x8x8xf32>
    %c0_44 = arith.constant 0 : index
    %c24 = arith.constant 24 : index
    %c0_45 = arith.constant 0 : index
    %94 = vector.load %arg11[%c0_44, %c24, %c0_45] : memref<1x32x8xf32, #tpu.memory_space<vmem>>, vector<1x8x8xf32>
    tpu.vector_store %arg11[%c0_44, %c24, %c0_45], %93 {strides = array<i32>} : memref<1x32x8xf32, #tpu.memory_space<vmem>>, vector<1x8x8xf32>,
    "tpu.trace_start"() <{level = 10 : i32, message = "blm,bmd->bld"}> : () -> ()
    %cst_46 = arith.constant dense<0.000000e+00> : vector<1x8x8xf32>
    %95 = tpu.matmul %93, %82, %cst_46 {dimension_numbers = #tpu.dot_dimension_numbers<[2], [1], [1], [2], [0, 0, 0, 1, 1, 2], [0], [0]>} : vector<1x8x8xf32>, vector<1x8x8xf32>, vector<1x8x8xf32> -> vector<1x8x8xf32>
    "tpu.trace_stop"() : () -> ()
    %96 = vector.shape_cast %95 : vector<1x8x8xf32> to vector<8x8xf32>
    %c0_47 = arith.constant 0 : index
    %c24_48 = arith.constant 24 : index
    %97 = vector.load %arg12[%c0_47, %c24_48] : memref<8x32xf32, #tpu.memory_space<vmem>>, vector<8x8xf32>
    tpu.vector_store %arg12[%c0_47, %c24_48], %96 {strides = array<i32>} : memref<8x32xf32, #tpu.memory_space<vmem>>, vector<8x8xf32>,
    %c0_49 = arith.constant 0 : index
    %c0_50 = arith.constant 0 : index
    %98 = vector.load %arg12[%c0_49, %c0_50] : memref<8x32xf32, #tpu.memory_space<vmem>>, vector<8x32xf32>
    %c0_51 = arith.constant 0 : index
    %c0_52 = arith.constant 0 : index
    %99 = vector.load %arg8[%c0_51, %c0_52] : memref<32x32xf32, #tpu.memory_space<vmem>>, vector<32x32xf32>
    %cst_53 = arith.constant dense<0.000000e+00> : vector<8x32xf32>
    %100 = tpu.matmul %98, %99, %cst_53 {dimension_numbers = #tpu.dot_dimension_numbers<[1], [0], [0], [1], [0, 0, 1, 1], [], []>} : vector<8x32xf32>, vector<32x32xf32>, vector<8x32xf32> -> vector<8x32xf32>
    %c0_54 = arith.constant 0 : index
    %c0_55 = arith.constant 0 : index
    %101 = vector.load %arg9[%c0_54, %c0_55] : memref<1x32xf32, #tpu.memory_space<vmem>>, vector<1x32xf32>
    %102 = vector.shape_cast %101 : vector<1x32xf32> to vector<32xf32>
    %103 = vector.shape_cast %102 : vector<32xf32> to vector<1x32xf32>
    %104 = vector.broadcast %103 : vector<1x32xf32> to vector<8x32xf32>
    %105 = arith.addf %100, %104 : vector<8x32xf32>
    %106 = vector.shape_cast %105 : vector<8x32xf32> to vector<1x8x32xf32>
    %c0_56 = arith.constant 0 : index
    %c0_57 = arith.constant 0 : index
    %c0_58 = arith.constant 0 : index
    %107 = vector.load %arg10[%c0_56, %c0_57, %c0_58] : memref<1x8x32xf32, #tpu.memory_space<vmem>>, vector<1x8x32xf32>
    tpu.vector_store %arg10[%c0_56, %c0_57, %c0_58], %106 {strides = array<i32>} : memref<1x8x32xf32, #tpu.memory_space<vmem>>, vector<1x8x32xf32>,
    return
  }
  func.func @transform_0(%arg0: i32) -> (i32, i32, i32) {
    %c0_i32 = arith.constant 0 : i32
    %c0_i32_0 = arith.constant 0 : i32
    %c0_i32_1 = arith.constant 0 : i32
    return %arg0, %c0_i32, %c0_i32_0 : i32, i32, i32
  }
  func.func @transform_1(%arg0: i32) -> (i32, i32) {
    %c0_i32 = arith.constant 0 : i32
    %c0_i32_0 = arith.constant 0 : i32
    %c0_i32_1 = arith.constant 0 : i32
    return %c0_i32, %c0_i32_0 : i32, i32
  }
  func.func @transform_2(%arg0: i32) -> (i32, i32) {
    %c0_i32 = arith.constant 0 : i32
    %c0_i32_0 = arith.constant 0 : i32
    %c0_i32_1 = arith.constant 0 : i32
    return %c0_i32, %c0_i32_0 : i32, i32
  }
  func.func @transform_3(%arg0: i32) -> (i32, i32) {
    %c0_i32 = arith.constant 0 : i32
    %c0_i32_0 = arith.constant 0 : i32
    %c0_i32_1 = arith.constant 0 : i32
    return %c0_i32, %c0_i32_0 : i32, i32
  }
  func.func @transform_4(%arg0: i32) -> (i32, i32) {
    %c0_i32 = arith.constant 0 : i32
    %c0_i32_0 = arith.constant 0 : i32
    %c0_i32_1 = arith.constant 0 : i32
    return %c0_i32, %c0_i32_0 : i32, i32
  }
  func.func @transform_5(%arg0: i32) -> (i32, i32) {
    %c0_i32 = arith.constant 0 : i32
    %c0_i32_0 = arith.constant 0 : i32
    %c0_i32_1 = arith.constant 0 : i32
    return %c0_i32, %c0_i32_0 : i32, i32
  }
  func.func @transform_6(%arg0: i32) -> (i32, i32) {
    %c0_i32 = arith.constant 0 : i32
    %c0_i32_0 = arith.constant 0 : i32
    %c0_i32_1 = arith.constant 0 : i32
    return %c0_i32, %c0_i32_0 : i32, i32
  }
  func.func @transform_7(%arg0: i32) -> (i32, i32) {
    %c0_i32 = arith.constant 0 : i32
    %c0_i32_0 = arith.constant 0 : i32
    %c0_i32_1 = arith.constant 0 : i32
    return %c0_i32, %c0_i32_0 : i32, i32
  }
  func.func @transform_8(%arg0: i32) -> (i32, i32) {
    %c0_i32 = arith.constant 0 : i32
    %c0_i32_0 = arith.constant 0 : i32
    %c0_i32_1 = arith.constant 0 : i32
    return %c0_i32, %c0_i32_0 : i32, i32
  }
  func.func @transform_9(%arg0: i32) -> (i32, i32, i32) {
    %c0_i32 = arith.constant 0 : i32
    %c0_i32_0 = arith.constant 0 : i32
    %c0_i32_1 = arith.constant 0 : i32
    return %arg0, %c0_i32, %c0_i32_0 : i32, i32, i32
  }
  func.func @transform_10(%arg0: i32) -> (i32, i32, i32) {
    %c0_i32 = arith.constant 0 : i32
    %c0_i32_0 = arith.constant 0 : i32
    %c0_i32_1 = arith.constant 0 : i32
    return %arg0, %c0_i32, %c0_i32_0 : i32, i32, i32
  }
}

</mosaic_0001>

<bundles_post_ra>
// kernel: tpu_custom_call.1
= control target key start
LH: loop header
LB: loop body
LE: loop exit
PB: predicated region body
PF: predicated region fallthrough
CT: control target
= control target key end

     0   :  { %s2613_s0 = inlined_call_operand.hbm [shape: f32[2,8,32], index: 0, kind: input, shape index: {}]   ;;  %s2614_s1 = inlined_call_operand.hbm [shape: f32[32,32], index: 1, kind: input, shape index: {}]   ;;  %s2615_s2 = inlined_call_operand.vmem [shape: f32[1,32], index: 2, kind: input, shape index: {}]   ;;  %s2616_s3 = inlined_call_operand.hbm [shape: f32[32,32], index: 3, kind: input, shape index: {}]   ;;  %s2617_s4 = inlined_call_operand.vmem [shape: f32[1,32], index: 4, kind: input, shape index: {}]   ;;  %s2618_s5 = inlined_call_operand.hbm [shape: f32[32,32], index: 5, kind: input, shape index: {}]   ;;  %s2619_s6 = inlined_call_operand.vmem [shape: f32[1,32], index: 6, kind: input, shape index: {}]   ;;  %s2620_s7 = inlined_call_operand.hbm [shape: f32[32,32], index: 7, kind: input, shape index: {}]   ;;  %s2621_s8 = inlined_call_operand.vmem [shape: f32[1,32], index: 8, kind: input, shape index: {}]   ;;  %s2622_s9 = inlined_call_operand.hbm [shape: f32[2,8,32], index: 9, kind: output, shape index: {0}]   ;;  %s2623_s10 = inlined_call_operand.vmem [shape: f32[2,32,8], index: 10, kind: output, shape index: {1}]  }
   0x1   :  { %2628 = sst [smem:[#allocation17_spill]] %s2614_s1 }
   0x2   :  { %2629 = sst [smem:[#allocation18_spill]] %s2621_s8 }
   0x3   :  { %2630 = sst [smem:[#allocation19_spill]] %s2622_s9 }
   0x4   :  { %16 = vsyncpa [#allocation4], 0 }
   0x5   :  { %18 = vsyncpa [#allocation4 + $0x1], 0 }
   0x6   :  { %19 = vsyncpa [#allocation7], 0 }
   0x7   :  { %20 = vsyncpa [#allocation10], 0 }
   0x8   :  { %21 = vsyncpa [#allocation5], 0 }
   0x9   :  { %23 = vsyncpa [#allocation5 + $0x1], 0  ;;  %s2206_s13 = smov 0   ;;  %s2208_s14 = smov 0  }
   0xa   :  { %s2210_s15 = smov 0   ;;  %s2212_s16 = smov 0  }
   0xb LB: > { %s2134_s17 = smov [#allocation6]   ;;  %s2227_s19 = sadd.s32 4294967295, %s2132_s16   ;;  %s2132_s16 = sphi %s2212_s16, %s2654_s16   ;;  %s2128_s15 = sphi %s2210_s15, %s2653_s15   ;;  %s2124_s14 = sphi %s2208_s14, %s2652_s14   ;;  %s2120_s13 = sphi %s2206_s13, %s2651_s13  }
   0xc   : > { %s292_s18 = sshll.u32 %s2134_s17, 4  ;;  %p1616_p0 = scmp.ge.s32.totalorder %s2132_s16, 1  ;;  %s2232_s18 = int_to_ptr.vmem [resolvable:$true] %s292_s18 }
   0xd   : > { %p2625_p1 = scmp.eq.s32.totalorder %s2227_s19, 0  ;;  %p280_p2 = scmp.lt.s32.totalorder %s2132_s16, 3 }
   0xe   : > { %s2135_s21 = smov [#allocation9]   ;;  %s2136_s24 = smov [#allocation8]  }
   0xf   : > { %p2234_p3 = pnand %p1616_p0, %p280_p2  ;;  %s324_s22 = sshll.u32 %s2135_s21, 4  ;;  %s2247_s22 = int_to_ptr.vmem [resolvable:$true] %s324_s22 }
  0x10   : > { %s308_s25 = sshll.u32 %s2136_s24, 4  ;;  %s2633_s1 = sld [smem:[#allocation17_spill]]  ;;  %s2249_s25 = int_to_ptr.vmem [resolvable:$true] %s308_s25 }
  0x11   : > { %s2631_s20 = scalar_select %p2234_p3, 1, 0 }
  0x12   : > { %p1822_p5 = pneg %p2234_p3 }
  0x14   : > { %p2243_p6 = pnand %p1822_p5, %p2625_p1 }
  0x16   : > { %s1916_s28 = scalar_lea.hbm %s2633_s1, 512  ;;  %p2259_p8 = pneg %p2243_p6 }
  0x17   : > { %p1917_p7 = scmp.ne.s32.totalorder %s2633_s1, %s1916_s28  ;;  %p1923_p11 = scmp.lt.u32.totalorder %s1916_s28, %s2633_s1 }
  0x19   : > { %p1919_p9 = pnand %p2259_p8, %p1917_p7 }
  0x1b   : > { %p1920_p10 = pneg %p1919_p9 }
  0x1d   : > { %p1925_p12 = pnand %p1923_p11, %p1920_p10 }
  0x1f   : > { %1928 = shalt.err (!%p1925_p12)
}
  0x20   : > { %s1929_s21 = scalar_lea.vmem %s2232_s18, 512  ;;  %p1937_p5 = scmp.lt.s32.totalorder %s2232_s18, %s2232_s18 }
  0x21   : > { %p1930_p13 = scmp.ne.s32.totalorder %s2232_s18, %s1929_s21  ;;  %p1938_p4 = scmp.lt.s32.totalorder %s1929_s21, %s1929_s21 }
  0x23   : > { %p1932_p0 = pnand %p1930_p13, %p2259_p8  ;;  %p1939_p7 = por %p1938_p4, %p1937_p5 }
  0x25   : > { %p1933_p2 = pneg %p1932_p0 }
  0x27   : > { %p1940_p9 = pnand %p1939_p7, %p1933_p2 }
  0x29   : > { %1943 = shalt.err (!%p1940_p9)
}
  0x2a   : > { %s2137_s24 = smov 128   ;;  %s2138_s26 = smov 8  }
  0x2b   : > { %1825 = dma.hbm_to_vmem [thread:$0]  (!%p2243_p6), %s2633_s1, 512, %s2232_s18, [#allocation7], %s2137_s24, %s2137_s24, %s2138_s26  }
  0x2c   : > { %s1944_s12 = scalar_lea.hbm %s2618_s5, 512 }
  0x2d   : > { %p1945_p4 = scmp.ne.s32.totalorder %s2618_s5, %s1944_s12  ;;  %p1951_p12 = scmp.lt.u32.totalorder %s1944_s12, %s2618_s5 }
  0x2f   : > { %p1947_p10 = pnand %p1945_p4, %p2259_p8 }
  0x31   : > { %p1948_p11 = pneg %p1947_p10 }
  0x33   : > { %p1953_p13 = pnand %p1951_p12, %p1948_p11 }
  0x35   : > { %1956 = shalt.err (!%p1953_p13)
}
  0x36   : > { %s1957_s18 = scalar_lea.vmem %s2247_s22, 512  ;;  %p1965_p7 = scmp.lt.s32.totalorder %s2247_s22, %s2247_s22 }
  0x37   : > { %p1958_p0 = scmp.ne.s32.totalorder %s2247_s22, %s1957_s18  ;;  %p1966_p9 = scmp.lt.s32.totalorder %s1957_s18, %s1957_s18 }
  0x39   : > { %p1960_p2 = pnand %p1958_p0, %p2259_p8  ;;  %p1967_p4 = por %p1966_p9, %p1965_p7 }
  0x3b   : > { %p1961_p5 = pneg %p1960_p2 }
  0x3d   : > { %p1968_p10 = pnand %p1967_p4, %p1961_p5 }
  0x3f   : > { %1971 = shalt.err (!%p1968_p10)
}
  0x40   : > { %1831 = dma.hbm_to_vmem [thread:$0]  (!%p2243_p6), %s2618_s5, 512, %s2247_s22, [#allocation10], %s2137_s24, %s2137_s24, %s2138_s26  }
  0x41   : > { %s1972_s29 = scalar_lea.hbm %s2616_s3, 512 }
  0x42   : > { %p1973_p11 = scmp.ne.s32.totalorder %s2616_s3, %s1972_s29  ;;  %p1979_p0 = scmp.lt.u32.totalorder %s1972_s29, %s2616_s3 }
  0x44   : > { %p1975_p12 = pnand %p1973_p11, %p2259_p8 }
  0x46   : > { %p1976_p13 = pneg %p1975_p12 }
  0x48   : > { %p1981_p2 = pnand %p1979_p0, %p1976_p13 }
  0x4a   : > { %1984 = shalt.err (!%p1981_p2)
}
  0x4b   : > { %s1985_s22 = scalar_lea.vmem %s2249_s25, 512  ;;  %p1993_p4 = scmp.lt.s32.totalorder %s2249_s25, %s2249_s25 }
  0x4c   : > { %p1986_p5 = scmp.ne.s32.totalorder %s2249_s25, %s1985_s22  ;;  %p1994_p10 = scmp.lt.s32.totalorder %s1985_s22, %s1985_s22 }
  0x4e   : > { %p1988_p7 = pnand %p1986_p5, %p2259_p8  ;;  %p1995_p11 = por %p1994_p10, %p1993_p4 }
  0x50   : > { %p1989_p9 = pneg %p1988_p7 }
  0x52   : > { %p1996_p12 = pnand %p1995_p11, %p1989_p9 }
  0x54   : > { %1999 = shalt.err (!%p1996_p12)
}
  0x55   : > { %1828 = dma.hbm_to_vmem [thread:$0]  (!%p2243_p6), %s2616_s3, 512, %s2249_s25, [#allocation7], %s2137_s24, %s2137_s24, %s2138_s26  }
  0x56   : > { %s2139_s9 = smov [#allocation11]   ;;  %s2000_s30 = scalar_lea.hbm %s2620_s7, 512 }
  0x57   : > { %s340_s27 = sshll.u32 %s2139_s9, 4  ;;  %p2001_p13 = scmp.ne.s32.totalorder %s2620_s7, %s2000_s30  ;;  %s341_s27 = int_to_ptr.vmem [resolvable:$true] %s340_s27 }
  0x58   : > { %p2007_p5 = scmp.lt.u32.totalorder %s2000_s30, %s2620_s7 }
  0x59   : > { %p2003_p0 = pnand %p2001_p13, %p2259_p8 }
  0x5b   : > { %p2004_p2 = pneg %p2003_p0 }
  0x5d   : > { %p2009_p7 = pnand %p2007_p5, %p2004_p2 }
  0x5f   : > { %2012 = shalt.err (!%p2009_p7)
}
  0x60   : > { %s2013_s25 = scalar_lea.vmem %s341_s27, 512  ;;  %p2021_p11 = scmp.lt.s32.totalorder %s341_s27, %s341_s27 }
  0x61   : > { %p2014_p9 = scmp.ne.s32.totalorder %s341_s27, %s2013_s25  ;;  %p2022_p12 = scmp.lt.s32.totalorder %s2013_s25, %s2013_s25 }
  0x63   : > { %p2016_p4 = pnand %p2014_p9, %p2259_p8  ;;  %p2023_p1 = por %p2022_p12, %p2021_p11 }
  0x65   : > { %p2017_p10 = pneg %p2016_p4 }
  0x67   : > { %p2024_p3 = pnand %p2023_p1, %p2017_p10 }
  0x69   : > { %2027 = shalt.err (!%p2024_p3)
}
  0x6a   : > { %1834 = dma.hbm_to_vmem [thread:$0]  (!%p2243_p6), %s2620_s7, 512, %s341_s27, [#allocation10], %s2137_s24, %s2137_s24, %s2138_s26  }
  0x6b   : > { %s1615_s23 = sadd.s32 4294967294, %s2132_s16   ;;  %s2358_s11 = sadd.s32 1, %s2132_s16  }
  0x6c   : > { %s33_s9 = ssub.s32 %s2132_s16, %s2358_s11  ;;  %s36_s28 = sadd.s32 1, %s2128_s15 }
  0x6d   : > { %p34_p1 = scmp.eq.s32.totalorder %s33_s9, 0  ;;  %p43_p3 = scmp.ne.s32.totalorder %s2128_s15, %s2124_s14 }
  0x6e   : > { %p44_p8 = scmp.eq.s32.totalorder %s2132_s16, 0  ;;  %p49_p13 = scmp.ne.s32.totalorder %s2124_s14, %s2120_s13 }
  0x6f   : > { %s2369_s29 = scalar_select %p34_p1, %s2128_s15, %s36_s28  }
  0x70   : > { %p2371_p0 = por %p44_p8, %p43_p3  ;;  %p2636_p2 = scmp.eq.s32.totalorder %s2227_s19, 0 }
  0x71   : > { %p241_p5 = scmp.eq.s32.totalorder %s2227_s19, 1  ;;  %p247_p7 = scmp.eq.s32.totalorder %s1615_s23, 1 }
  0x72   : > { %p2377_p6 = por %p2636_p2, %p49_p13  ;;  %p1847_p9 = scmp.lt.s32.totalorder %s2132_s16, 2 }
  0x73   : > { %s357_s26 = sand.u32 1, %s2128_s15   ;;  %p2384_p4 = por %p241_p5, %p43_p3 }
  0x74   : > { %p2388_p10 = por %p247_p7, %p49_p13  ;;  %s1622_s17 = sshll.u32 %s357_s26, 3 }
  0x75   : > { %s2638_s27 = scalar_select %p2384_p4, 1, 0 }
  0x76   : > { %s2639_s12 = scalar_select %p2388_p10, 1, 0 }
  0x77   : > { %s1623_s21 = sshll.u32 %s2132_s16, 7  ;;  %s361_s8 = scalar_lea.vmem [#allocation3], %s1622_s17 }
  0x78   : > { %s2396_s18 = scalar_lea.hbm %s2613_s0, %s1623_s21  ;;  %s368_s23 = sshll.u32 %s361_s8, 4  ;;  %s2398_s23 = int_to_ptr.vmem [resolvable:$true] %s368_s23 }
  0x79   : > { %p2402_p11 = pnand %p1847_p9, %p2371_p0  ;;  %s358_s28 = scalar_lea.sflag [#allocation4], %s357_s26 }
  0x7a   : > { %s2028_s1 = scalar_lea.hbm %s2396_s18, 128  ;;  %s2033_s22 = scalar_lea.hbm %s2613_s0, 256 }
  0x7b   : > { %p2029_p12 = scmp.ne.s32.totalorder %s2396_s18, %s2028_s1  ;;  %p2030_p1 = pneg %p2402_p11 }
  0x7c   : > { %p2034_p13 = scmp.lt.u32.totalorder %s2396_s18, %s2613_s0  ;;  %p2035_p0 = scmp.lt.u32.totalorder %s2033_s22, %s2028_s1 }
  0x7d   : > { %p2031_p3 = pnand %p2030_p1, %p2029_p12  ;;  %p2037_p5 = scmp.lt.u32.totalorder %s2028_s1, %s2396_s18 }
  0x7e   : > { %p2036_p2 = por %p2035_p0, %p2034_p13 }
  0x7f   : > { %p2032_p8 = pneg %p2031_p3 }
  0x80   : > { %p2038_p7 = por %p2037_p5, %p2036_p2 }
  0x82   : > { %p2039_p9 = pnand %p2038_p7, %p2032_p8 }
  0x84   : > { %2042 = shalt.err (!%p2039_p9)
}
  0x85   : > { %s2043_s26 = scalar_lea.vmem %s2398_s23, 128  ;;  %s2140_s8 = smov [#allocation3]  }
  0x86   : > { %p2044_p12 = scmp.ne.s32.totalorder %s2398_s23, %s2043_s26  ;;  %s2048_s17 = sshll.u32 %s2140_s8, 4  ;;  %s2049_s17 = int_to_ptr.vmem [resolvable:$false] %s2048_s17 }
  0x87   : > { %s2050_s21 = scalar_lea.vmem %s2049_s17, 256  ;;  %p2051_p4 = scmp.lt.s32.totalorder %s2398_s23, %s2049_s17 }
  0x88   : > { %p2046_p3 = pnand %p2044_p12, %p2030_p1  ;;  %p2052_p13 = scmp.lt.s32.totalorder %s2050_s21, %s2043_s26 }
  0x8a   : > { %p2047_p10 = pneg %p2046_p3  ;;  %p2053_p0 = por %p2052_p13, %p2051_p4 }
  0x8c   : > { %p2054_p2 = pnand %p2053_p0, %p2047_p10 }
  0x8e   : > { %2057 = shalt.err (!%p2054_p2)
}
  0x8f   : > { %1838 = dma.hbm_to_vmem [thread:$0]  (!%p2402_p11), %s2396_s18, 128, %s2398_s23, %s358_s28  }
  0x90   : > { %p2641_p8 = scmp.ne.s32.totalorder %s2631_s20, 0 }
  0x91   : > { %s2434_s1 = sand.u32 (!%p2641_p8), 1, %s2124_s14  }
  0x92   : > { %377 = sbr.rel (%p2641_p8) target bundleno = 2071 (0x817), region = 56  ;;  %s1625_s22 = sshll.u32 (!%p2641_p8), %s2434_s1, 3 }
  0x93   : > { %s380_s30 = scalar_lea.sflag (!%p2641_p8), [#allocation4], %s2434_s1  ;;  %s2440_s25 = scalar_lea.vmem (!%p2641_p8), [#allocation3], %s1625_s22 }
  0x99   : > { %2103 = dma.done.wait (%p2377_p6), %s380_s30, 128  }
  0x9a   : > { %2105 = vsyncadd (%p2377_p6), %s380_s30, 4294967168  ;;  %p2642_p4 = scmp.eq.s32.totalorder %s2227_s19, 0 }
  0x9c   : > { %2107 = dma.done.wait (%p2642_p4), [#allocation7], 1024   ;;  %p2643_p10 = pmov %p2642_p4 }
  0x9d   : > { %p2644_p11 = pmov %p2642_p4 }
  0x9e   : > { %2109 = vsyncadd (%p2643_p10), [#allocation7], 4294966272 }
  0x9f   : > { %2111 = dma.done.wait (%p2644_p11), [#allocation10], 1024   ;;  %p2645_p1 = pmov %p2642_p4 }
  0xa0   : > { %v2141_v0 = vmov 0.0|0.0   ;;  %vm2142_vm0 = vmmov 0   ;;  %v2143_v1 = vmov 0.0   ;;  %v532_v2 = vld [vmem:[#allocation8] sm:$0xff]  ;;  %v533_v3 = vld [vmem:[#allocation8 + $0x8] sm:$0xff]  ;;  %v534_v7 = vld [vmem:[#allocation8 + $0x10] sm:$0xff] }
  0xa1   : > { %2113 = vsyncadd (%p2645_p1), [#allocation10], 4294966272  ;;  %1784 = vmatprep.subr.bf16.mxu1 %v2141_v0  ;;  %1778 = vmatprep.subr.bf16.mxu0 %v2141_v0  ;;  %v447_v4 = vld [vmem:[#allocation6] sm:$0xff]  ;;  %v1785_v5 = vpack.c.bf16 %v533_v3, %v532_v2  ;;  %v448_v6 = vld [vmem:[#allocation6 + $0x8] sm:$0xff]  ;;  %vm458_vm1 = vcmask 261120   ;;  %vm694_vm2 = vcmask 64512  }
  0xa2   : > { %1713 = vmatprep.mubr.msk.f32.mxu1 %vm2142_vm0, %v2143_v1  ;;  %1702 = vmatprep.mubr.msk.f32.mxu0 %vm2142_vm0, %v2143_v1  ;;  %v535_v8 = vld [vmem:[#allocation8 + $0x18] sm:$0xff]  ;;  %v1779_v9 = vpack.c.bf16 %v448_v6, %v447_v4  ;;  %v449_v10 = vld [vmem:[#allocation6 + $0x10] sm:$0xff]  ;;  %v1635_v15 = vld [vmem:[%s2617_s4] ss:$0 sm:$0xff]  ;;  %s2144_s9 = smov 120   ;;  %s2145_s28 = smov 112  }
  0xa3   : > { %v450_v11 = vld [vmem:[#allocation6 + $0x18] sm:$0xff]  ;;  %1786 = vmatpush3.bf16.msra.mxu1 %v1785_v5  ;;  %v1788_v12 = vpack.c.bf16 %v535_v8, %v534_v7  ;;  %v1633_v16 = vld [vmem:[%s2615_s2] ss:$0 sm:$0xff]  ;;  %s2146_s26 = smov 104   ;;  %v613_v23 = vld [vmem:[#allocation9] sm:$0xff]  ;;  %p441_p6 = scmp.lt.s32.totalorder %s2227_s19, 1 }
  0xa4   : > { %1780 = vmatpush3.bf16.msra.mxu0 %v1779_v9  ;;  %1787 = vmatprep.subr.bf16.mxu1 %v2141_v0  ;;  %v1782_v13 = vpack.c.bf16 %v450_v11, %v449_v10  ;;  %v446_v14 = vld [vmem:[%s2440_s25] sm:$0xff]  ;;  %v614_v24 = vld [vmem:[#allocation9 + $0x8] sm:$0xff]  ;;  %s2147_s18 = smov 8   ;;  %s2148_s23 = smov 16   ;;  %vm1028_vm3 = vcmask 130112   ;;  %vm1200_vm4 = vcmask 195712  }
  0xa5   : > { %1781 = vmatprep.subr.bf16.mxu0 %v2141_v0  ;;  %v615_v25 = vld [vmem:[#allocation9 + $0x10] sm:$0xff]  ;;  %v1791_v26 = vpack.c.bf16 %v614_v24, %v613_v23  ;;  %v616_v27 = vld [vmem:[#allocation9 + $0x18] sm:$0xff]  ;;  %v1637_v37 = vld [vmem:[%s2619_s6] ss:$0 sm:$0xff]  ;;  %s442_s21 = scalar_select %p441_p6, %s2227_s19, 1  ;;  %vm1372_vm5 = vcmask 261312  }
  0xa6   : > { %v1794_v28 = vpack.c.bf16 %v616_v27, %v615_v25  ;;  %v1376_v27 = vld [vmem:[#allocation11 + $0x8] sm:$0xff]  ;;  %s2646_s8 = sld [smem:[#allocation18_spill]]  ;;  %s1654_s17 = sshll.u32 %s2227_s19, 7 }
  0xa7   : > { %1789 = vmatpush3.bf16.msra.mxu1 %v1788_v12  ;;  %s1657_s30 = sshll.u32 %s442_s21, 5  ;;  %s433_s21 = scalar_lea.vmem [#allocation12], %s1625_s22 }
  0xa8   : > { %1783 = vmatpush3.bf16.msra.mxu0 %v1782_v13  ;;  %1727 = vmatprep.subr.mxu1 %v2143_v1  ;;  %s2514_s24 = scalar_lea.vmem %s2623_s10, %s1657_s30  ;;  %s1479_s30 = sshll.u32 %s433_s21, 4  ;;  %s2570_s30 = int_to_ptr.vmem [resolvable:$true] %s1479_s30 }
  0xa9   : > { %1790 = vmatprep.subr.bf16.mxu0 %v2141_v0  ;;  %s2058_s19 = scalar_lea.vmem %s2570_s30, 128  ;;  %p2648_p7 = scmp.ne.s32.totalorder %s2638_s27, 0 }
  0xaa   : > { %1714 = vmatmul.mubr.msk.f32.vlgmr.msra.gmra.mrb[0].mxu1 %vm458_vm1, %v446_v14  ;;  %p2059_p5 = scmp.ne.s32.totalorder %s2570_s30, %s2058_s19  ;;  %s2150_s22 = smov [#allocation12]  }
  0xab   : > { %1703 = vmatmul.mubr.msk.f32.vlgmr.msra.gmra.mrb[0].mxu0 %vm458_vm1, %v446_v14  ;;  %1729 = vmatprep.mubr.msk.f32.mxu1 %vm2142_vm0, %v2143_v1 }
  0xac   : > { %1724 = vmatprep.mubr.msk.f32.mxu0 %vm2142_vm0, %v2143_v1  ;;  %1792 = vmatpush3.bf16.msra.mxu0 %v1791_v26  ;;  %v1375_v26 = vld [vmem:[#allocation11] sm:$0xff]  ;;  %p2060_p9 = pnand %p2059_p5, %p2648_p7 }
  0xad   : > { %1793 = vmatprep.subr.bf16.mxu0 %v2141_v0 }
  0xae   : > { %p2061_p12 = pneg %p2060_p9 }
  0xb0   : > { %1795 = vmatpush3.bf16.msra.mxu0 %v1794_v28  ;;  %v1797_v28 = vpack.c.bf16 %v1376_v27, %v1375_v26 }
  0xb1   : > { %1747 = vmatprep.subr.mxu0 %v2143_v1 }
  0xb3   : > { %1725 = vmatmul.mubr.msk.f32.vlgmr.msra.gmra.mrb[2].mxu0 %vm458_vm1, %v446_v14 }
  0xb4   : > { %1749 = vmatprep.mubr.msk.f32.mxu0 %vm2142_vm0, %v2143_v1 }
 0x17d   : > { %v609_v17 = vpop.f32.mrb[0].mxu1 }
 0x17e   : > { %v610_v18 = vadd.f32 %v1635_v15, %v609_v17  ;;  %v1715_v19 = vpop.f32.mrb[1].mxu1  ;;  %v528_v20 = vpop.f32.mrb[0].mxu0 }
 0x17f   : > { %v529_v21 = vadd.f32 %v1633_v16, %v528_v20  ;;  %v1704_v22 = vpop.f32.mrb[1].mxu0 }
 0x180   : > { %859 = vrot.lane.b32.xlu1 %v610_v18, %s2144_s9  ;;  %1728 = vmatpush3.xpose.msk.msra.mxu1 %vm694_vm2, %v610_v18 }
 0x181   : > { %1732 = vmatprep.subr.mxu1 %v2143_v1 }
 0x183   : > { %1730 = vmatmul.mubr.msk.f32.vlgmr.msra.gmra.mrb[2].mxu1 %vm694_vm2, %v529_v21 }
 0x184   : > { %857 = vrot.lane.b32.xlu1 %v529_v21, %s2144_s9  ;;  %1734 = vmatprep.mubr.msk.f32.mxu1 %vm2142_vm0, %v2143_v1 }
 0x186   : > { %v690_v38 = vpop.f32.mrb[2].mxu0 }
 0x187   : > { %v2497_v39 = vadd.f32 %v1637_v37, %v690_v38  ;;  %v1726_v40 = vpop.f32.mrb[3].mxu0 }
 0x188   : > { %1030 = vrot.lane.b32.xlu1 %v529_v21, %s2145_s28  ;;  %v1651_v40 = vld [vmem:[%s2646_s8] ss:$0 sm:$0xff] }
 0x189   : > { %1733 = vmatpush3.msra.mxu1 %v2497_v39 }
 0x18a   : > { %1737 = vmatprep.subr.mxu1 %v2143_v1 }
 0x18c   : > { %1204 = vrot.lane.b32.xlu1 %v610_v18, %s2146_s26 }
 0x190   : > { %1202 = vrot.lane.b32.xlu1 %v529_v21, %s2146_s26 }
 0x1f2   : > { %v860_v41 = vpop.permute.xlu1 %859 }
 0x1f6   : > { %v858_v42 = vpop.permute.xlu1 %857 }
 0x1fa   : > { %v1031_v43 = vpop.permute.xlu1 %1030 }
 0x1fe   : > { %v1205_v46 = vpop.permute.xlu1 %1204 }
 0x202   : > { %v1203_v48 = vpop.permute.xlu1 %1202 }
 0x256   : > { %v767_v29 = vpop.f32.mrb[2].mxu1 }
 0x257   : > { %v1731_v30 = vpop.f32.mrb[3].mxu1  ;;  %v771_v31 = vsel %vm694_vm2, %v767_v29, -inf }
 0x258   : > { %772 = vmax.xlane.f32.xlu0 %v771_v31  ;;  %v1378_v30 = vld [vmem:[#allocation11 + $0x18] sm:$0xff] }
 0x2e5   : > { %v773_v32 = vpop.xlane.xlu0 %772 }
 0x2e6   : > { %v774_v33 = vsub.f32 %v767_v29, %v773_v32  ;;  %v1377_v29 = vld [vmem:[#allocation11 + $0x10] sm:$0xff] }
 0x2e7   : > { %v1800_v31 = vpack.c.bf16 %v1378_v30, %v1377_v29 }
 0x2e8   : > { %v775_v34 = vmul.f32 1.442695, %v774_v33 }
 0x2ea   : > { %1900 = vpow2.f32 %v775_v34 }
 0x2f4   : > { %v1901_v35 = vpop.eup %1900 }
 0x2f5   : > { %v777_v36 = vsel %vm694_vm2, %v1901_v35, 0.0 }
 0x2f6   : > { %778 = vadd.xlane.f32.xlu0 %v777_v36 }
 0x30c   : > { %1032 = vrot.lane.b32.xlu0 %v610_v18, %s2145_s28 }
 0x383   : > { %v779_v44 = vpop.xlane.xlu0 %778 }
 0x384   : > { %1902 = vrcp.f32 %v779_v44 }
 0x387   : > { %v1033_v45 = vpop.permute.xlu0 %1032 }
 0x388   : > { %1748 = vmatpush3.xpose.msk.msra.mxu0 %vm694_vm2, %v1033_v45 }
 0x389   : > { %1757 = vmatprep.subr.mxu0 %v2143_v1 }
 0x38b   : > { %1750 = vmatmul.mubr.msk.f32.vlgmr.msra.gmra.mrb[4].mxu0 %vm694_vm2, %v1031_v43 }
 0x38c   : > { %1758 = vmatpush3.xpose.msk.msra.mxu0 %vm694_vm2, %v1205_v46  ;;  %1759 = vmatprep.mubr.msk.f32.mxu0 %vm2142_vm0, %v2143_v1 }
 0x38d   : > { %1796 = vmatprep.subr.bf16.mxu0 %v2141_v0 }
 0x38e   : > { %v1903_v47 = vpop.eup %1902 }
 0x38f   : > { %v781_v49 = vmul.f32 %v1903_v47, %v1901_v35  ;;  %1760 = vmatmul.mubr.msk.f32.vlgmr.msra.gmra.mrb[6].mxu0 %vm694_vm2, %v1203_v48 }
 0x390   : > { %1775 = vmatprep.mubr.msk.f32.mxu0 %vm2142_vm0, %v2143_v1  ;;  %1798 = vmatpush3.bf16.msra.mxu0 %v1797_v28 }
 0x391   : > { %782 = vst.msk [vmem:[%s2514_s24] sm:$0xff] %vm694_vm2, %v781_v49  ;;  %1735 = vmatmul.mubr.msk.f32.vlgmr.msra.gmra.mrb[4].mxu1 %vm694_vm2, %v781_v49  ;;  %1799 = vmatprep.subr.bf16.mxu0 %v2141_v0 }
 0x392   : > { %1738 = vmatpush3.xpose.msk.msra.mxu1 %vm694_vm2, %v860_v41  ;;  %1739 = vmatprep.mubr.msk.f32.mxu1 %vm2142_vm0, %v2143_v1 }
 0x393   : > { %1742 = vmatprep.subr.mxu1 %v2143_v1 }
 0x394   : > { %1801 = vmatpush3.bf16.msra.mxu0 %v1800_v31 }
 0x395   : > { %1740 = vmatmul.mubr.msk.f32.vlgmr.msra.gmra.mrb[6].mxu1 %vm694_vm2, %v858_v42 }
 0x396   : > { %1744 = vmatprep.mubr.msk.f32.mxu1 %vm2142_vm0, %v2143_v1 }
 0x45e   : > { %v1104_v50 = vpop.f32.mrb[4].mxu0 }
 0x45f   : > { %v1751_v51 = vpop.f32.mrb[5].mxu0  ;;  %v1108_v52 = vsel %vm694_vm2, %v1104_v50, -inf }
 0x460   : > { %1109 = vmax.xlane.f32.xlu0 %v1108_v52 }
 0x462   : > { %v1276_v53 = vpop.f32.mrb[6].mxu0 }
 0x463   : > { %v1761_v54 = vpop.f32.mrb[7].mxu0  ;;  %v1280_v60 = vsel %vm694_vm2, %v1276_v53, -inf }
 0x464   : > { %v852_v55 = vpop.f32.mrb[4].mxu1 }
 0x465   : > { %856 = vst.msk [vmem:[#allocation2] sm:$0xff] %vm694_vm2, %v852_v55  ;;  %v1736_v56 = vpop.f32.mrb[5].mxu1 }
 0x468   : > { %v931_v57 = vpop.f32.mrb[6].mxu1 }
 0x469   : > { %v1741_v58 = vpop.f32.mrb[7].mxu1  ;;  %v935_v59 = vsel %vm694_vm2, %v931_v57, -inf }
 0x46a   : > { %936 = vmax.xlane.f32.xlu1 %v935_v59 }
 0x46e   : > { %1281 = vmax.xlane.f32.xlu1 %v1280_v60 }
 0x4ed   : > { %v1110_v61 = vpop.xlane.xlu0 %1109 }
 0x4ee   : > { %v1111_v62 = vsub.f32 %v1104_v50, %v1110_v61 }
 0x4f0   : > { %v1112_v63 = vmul.f32 1.442695, %v1111_v62 }
 0x4f2   : > { %1904 = vpow2.f32 %v1112_v63 }
 0x4f7   : > { %v937_v2 = vpop.xlane.xlu1 %936 }
 0x4f8   : > { %v938_v10 = vsub.f32 %v931_v57, %v937_v2 }
 0x4fa   : > { %v939_v11 = vmul.f32 1.442695, %v938_v10 }
 0x4fb   : > { %v1282_v3 = vpop.xlane.xlu1 %1281 }
 0x4fc   : > { %v1905_v4 = vpop.eup %1904  ;;  %v1283_v5 = vsub.f32 %v1276_v53, %v1282_v3 }
 0x4fd   : > { %v1114_v6 = vsel %vm694_vm2, %v1905_v4, 0.0 }
 0x4fe   : > { %v1284_v7 = vmul.f32 1.442695, %v1283_v5  ;;  %1115 = vadd.xlane.f32.xlu0 %v1114_v6 }
 0x500   : > { %1906 = vpow2.f32 %v1284_v7 }
 0x501   : > { %1908 = vpow2.f32 %v939_v11 }
 0x50a   : > { %v1907_v8 = vpop.eup %1906 }
 0x50b   : > { %v1286_v9 = vsel %vm694_vm2, %v1907_v8, 0.0  ;;  %v1909_v12 = vpop.eup %1908 }
 0x50c   : > { %1287 = vadd.xlane.f32.xlu1 %v1286_v9  ;;  %v941_v13 = vsel %vm694_vm2, %v1909_v12, 0.0 }
 0x514   : > { %948 = vrot.lane.b32.xlu0 %v2497_v39, %s2144_s9  ;;  %s2149_s9 = smov 24  }
 0x51d   : > { %1120 = vrot.lane.b32.xlu1 %v2497_v39, %s2145_s28 }
 0x541   : > { %942 = vadd.xlane.f32.xlu1 %v941_v13 }
 0x552   : > { %1292 = vrot.lane.b32.xlu1 %v2497_v39, %s2146_s26 }
 0x58b   : > { %v1116_v14 = vpop.xlane.xlu0 %1115 }
 0x58c   : > { %1910 = vrcp.f32 %v1116_v14 }
 0x58f   : > { %v949_v15 = vpop.permute.xlu0 %948 }
 0x590   : > { %1743 = vmatpush3.msra.mxu1 %v949_v15 }
 0x591   : > { %1752 = vmatprep.subr.mxu1 %v2143_v1 }
 0x596   : > { %v1911_v16 = vpop.eup %1910 }
 0x597   : > { %v1118_v17 = vmul.f32 %v1911_v16, %v1905_v4 }
 0x599   : > { %1119 = vst.msk [vmem:[%s2514_s24 + $0x10] sm:$0xff] %vm694_vm2, %v1118_v17  ;;  %v1288_v18 = vpop.xlane.xlu1 %1287 }
 0x59a   : > { %1912 = vrcp.f32 %v1288_v18 }
 0x59d   : > { %v1121_v21 = vpop.permute.xlu1 %1120 }
 0x5a4   : > { %v1913_v19 = vpop.eup %1912 }
 0x5a5   : > { %v1290_v20 = vmul.f32 %v1913_v19, %v1907_v8 }
 0x5a7   : > { %1291 = vst.msk [vmem:[%s2514_s24 + $0x18] sm:$0xff] %vm694_vm2, %v1290_v20 }
 0x5ce   : > { %v943_v22 = vpop.xlane.xlu1 %942 }
 0x5cf   : > { %1914 = vrcp.f32 %v943_v22 }
 0x5d2   : > { %v1293_v25 = vpop.permute.xlu1 %1292 }
 0x5d9   : > { %v1915_v23 = vpop.eup %1914 }
 0x5da   : > { %v945_v24 = vmul.f32 %v1915_v23, %v1909_v12 }
 0x5dc   : > { %946 = vst.msk [vmem:[%s2514_s24 + $0x8] sm:$0xff] %vm694_vm2, %v945_v24  ;;  %1745 = vmatmul.mubr.msk.f32.vlgmr.msra.gmra.mrb[8].mxu1 %vm694_vm2, %v945_v24  ;;  %s2647_s24 = sld [smem:[#allocation19_spill]] }
 0x5dd   : > { %1753 = vmatpush3.msra.mxu1 %v1121_v21  ;;  %1754 = vmatprep.mubr.msk.f32.mxu1 %vm2142_vm0, %v2143_v1 }
 0x5de   : > { %1762 = vmatprep.subr.mxu1 %v2143_v1 }
 0x5e0   : > { %1755 = vmatmul.mubr.msk.f32.vlgmr.msra.gmra.mrb[10].mxu1 %vm694_vm2, %v1118_v17 }
 0x5e1   : > { %1763 = vmatpush3.msra.mxu1 %v1293_v25  ;;  %1764 = vmatprep.mubr.msk.f32.mxu1 %vm2142_vm0, %v2143_v1 }
 0x5e4   : > { %1765 = vmatmul.mubr.msk.f32.vlgmr.msra.gmra.mrb[12].mxu1 %vm694_vm2, %v1290_v20 }
 0x6af   : > { %v1020_v32 = vpop.f32.mrb[8].mxu1 }
 0x6b0   : > { %1025 = vrot.lane.b32.xlu0 %v1020_v32, %s2147_s18  ;;  %v1746_v33 = vpop.f32.mrb[9].mxu1  ;;  %s2568_s18 = scalar_lea.hbm %s2647_s24, %s1654_s17 }
 0x6b3   : > { %v1192_v34 = vpop.f32.mrb[10].mxu1 }
 0x6b4   : > { %1197 = vrot.lane.b32.xlu1 %v1192_v34, %s2148_s23  ;;  %v1756_v1 = vpop.f32.mrb[11].mxu1  ;;  %s1461_s23 = scalar_lea.sflag [#allocation5], %s2434_s1 }
 0x6b7   : > { %v1364_v35 = vpop.f32.mrb[12].mxu1 }
 0x6b8   : > { %1369 = vrot.lane.b32.xlu0 %v1364_v35, %s2149_s9  ;;  %v1766_v36 = vpop.f32.mrb[13].mxu1  ;;  %s2062_s9 = sshll.u32 %s2150_s22, 4  ;;  %s2063_s9 = int_to_ptr.vmem [resolvable:$false] %s2062_s9 }
 0x6b9   : > { %s2064_s28 = scalar_lea.vmem %s2063_s9, 256  ;;  %p2065_p3 = scmp.lt.s32.totalorder %s2570_s30, %s2063_s9 }
 0x6ba   : > { %p2066_p13 = scmp.lt.s32.totalorder %s2064_s28, %s2058_s19 }
 0x6bc   : > { %p2067_p0 = por %p2066_p13, %p2065_p3 }
 0x6be   : > { %p2068_p2 = pnand %p2067_p0, %p2061_p12 }
 0x722   : > { %v1026_v37 = vpop.permute.xlu0 %1025 }
 0x723   : > { %1029 = vst.msk [vmem:[#allocation2] sm:$0xff] %vm1028_vm3, %v1026_v37 }
 0x726   : > { %v1198_v0 = vpop.permute.xlu1 %1197 }
 0x727   : > { %1201 = vst.msk [vmem:[#allocation2] sm:$0xff] %vm1200_vm4, %v1198_v0 }
 0x72a   : > { %v1370_v38 = vpop.permute.xlu0 %1369 }
 0x72b   : > { %1373 = vst.msk [vmem:[#allocation2] sm:$0xff] %vm1372_vm5, %v1370_v38 }
 0x732   : > { %v1374_v39 = vld [vmem:[#allocation2] sm:$0xff] }
 0x733   : > { %1776 = vmatmul.mubr.msk.f32.vlgmr.msra.gmra.mrb[8].mxu0 %vm458_vm1, %v1374_v39 }
 0x806   : > { %v1455_v41 = vpop.f32.mrb[8].mxu0 }
 0x807   : > { %v1456_v42 = vadd.f32 %v1651_v40, %v1455_v41  ;;  %v1777_v43 = vpop.f32.mrb[9].mxu0 }
 0x809   : > { %1459 = vst.msk [vmem:[%s433_s21] sm:$0xff] %vm458_vm1, %v1456_v42 }
 0x80a   : > { %2071 = shalt.err (!%p2068_p2)
}
 0x80b   : > { %s2072_s1 = scalar_lea.hbm %s2568_s18, 128  ;;  %s2076_s17 = scalar_lea.hbm %s2647_s24, 256 }
 0x80c   : > { %p2073_p8 = scmp.ne.s32.totalorder %s2568_s18, %s2072_s1  ;;  %p2077_p11 = scmp.lt.u32.totalorder %s2568_s18, %s2647_s24 }
 0x80d   : > { %p2078_p1 = scmp.lt.u32.totalorder %s2076_s17, %s2072_s1  ;;  %p2080_p5 = scmp.lt.u32.totalorder %s2072_s1, %s2568_s18 }
 0x80e   : > { %p2074_p4 = pnand %p2073_p8, %p2648_p7 }
 0x80f   : > { %p2079_p6 = por %p2078_p1, %p2077_p11 }
 0x810   : > { %p2075_p10 = pneg %p2074_p4 }
 0x811   : > { %p2081_p9 = por %p2080_p5, %p2079_p6 }
 0x813   : > { %p2082_p12 = pnand %p2081_p9, %p2075_p10 }
 0x815   : > { %2085 = shalt.err (!%p2082_p12)
}
 0x816   : > { %1820 = dma.vmem_to_hbm [thread:$0]  (%p2648_p7), %s2570_s30, 128, %s2568_s18, %s1461_s23  }
 0x817 PF: > { %s1494_s20 = sand.u32 1, %s2120_s13   ;;  %p2649_p3 = scmp.ne.s32.totalorder %s2639_s12, 0 }
 0x818   : > { %p2650_p13 = scmp.ge.s32.totalorder %s2132_s16, 2  ;;  %s1495_s19 = scalar_lea.sflag [#allocation5], %s1494_s20 }
 0x81a   : > { %p1840_p0 = pnand %p2650_p13, %p2649_p3 }
 0x81c   : > { %2115 = dma.done.wait (!%p1840_p0), %s1495_s19, 128  }
 0x81d   : > { %2117 = vsyncadd (!%p1840_p0), %s1495_s19, 4294967168  ;;  %p26_p2 = scmp.ge.s32.totalorder %s2358_s11, 4   ;;  %s2651_s13 = smov %s2124_s14 }
 0x81e   : > { %s2652_s14 = smov %s2128_s15  ;;  %s2653_s15 = smov %s2369_s29 }
 0x81f   : > { %s2654_s16 = smov %s2358_s11  ;;  %28 = sbr.rel (!%p26_p2) target bundleno = 11 (0xb), region = 129 }
 0x826   :  { %1508 = vsyncpa [#allocation4], 1 }
 0x827   :  { %1510 = vsyncpa [#allocation4 + $0x1], 1 }
 0x828   :  { %1511 = vsyncpa [#allocation7], 1 }
 0x829   :  { %1512 = vsyncpa [#allocation10], 1 }
 0x82a   :  { %1513 = vsyncpa [#allocation5], 1 }
 0x82b   :  { %1515 = vsyncpa [#allocation5 + $0x1], 1 }

// kernel: tpu_custom_call.1
= control target key start
LH: loop header
LB: loop body
LE: loop exit
PB: predicated region body
PF: predicated region fallthrough
CT: control target
= control target key end

     0   :  { %s2613_s0 = inlined_call_operand.hbm [shape: f32[2,8,32], index: 0, kind: input, shape index: {}]   ;;  %s2614_s1 = inlined_call_operand.hbm [shape: f32[32,32], index: 1, kind: input, shape index: {}]   ;;  %s2615_s2 = inlined_call_operand.vmem [shape: f32[1,32], index: 2, kind: input, shape index: {}]   ;;  %s2616_s3 = inlined_call_operand.hbm [shape: f32[32,32], index: 3, kind: input, shape index: {}]   ;;  %s2617_s4 = inlined_call_operand.vmem [shape: f32[1,32], index: 4, kind: input, shape index: {}]   ;;  %s2618_s5 = inlined_call_operand.hbm [shape: f32[32,32], index: 5, kind: input, shape index: {}]   ;;  %s2619_s6 = inlined_call_operand.vmem [shape: f32[1,32], index: 6, kind: input, shape index: {}]   ;;  %s2620_s7 = inlined_call_operand.hbm [shape: f32[32,32], index: 7, kind: input, shape index: {}]   ;;  %s2621_s8 = inlined_call_operand.vmem [shape: f32[1,32], index: 8, kind: input, shape index: {}]   ;;  %s2622_s9 = inlined_call_operand.hbm [shape: f32[2,8,32], index: 9, kind: output, shape index: {0}]   ;;  %s2623_s10 = inlined_call_operand.vmem [shape: f32[2,32,8], index: 10, kind: output, shape index: {1}]  }
   0x1   :  { %2628 = sst [smem:[#allocation17_spill]] %s2614_s1 }
   0x2   :  { %2629 = sst [smem:[#allocation18_spill]] %s2621_s8 }
   0x3   :  { %2630 = sst [smem:[#allocation19_spill]] %s2622_s9 }
   0x4   :  { %16 = vsyncpa [#allocation4], 0 }
   0x5   :  { %18 = vsyncpa [#allocation4 + $0x1], 0 }
   0x6   :  { %19 = vsyncpa [#allocation7], 0 }
   0x7   :  { %20 = vsyncpa [#allocation10], 0 }
   0x8   :  { %21 = vsyncpa [#allocation5], 0 }
   0x9   :  { %23 = vsyncpa [#allocation5 + $0x1], 0  ;;  %s2206_s13 = smov 0   ;;  %s2208_s14 = smov 0  }
   0xa   :  { %s2210_s15 = smov 0   ;;  %s2212_s16 = smov 0  }
   0xb LB: > { %s2134_s17 = smov [#allocation6]   ;;  %s2227_s19 = sadd.s32 4294967295, %s2132_s16   ;;  %s2132_s16 = sphi %s2212_s16, %s2654_s16   ;;  %s2128_s15 = sphi %s2210_s15, %s2653_s15   ;;  %s2124_s14 = sphi %s2208_s14, %s2652_s14   ;;  %s2120_s13 = sphi %s2206_s13, %s2651_s13  }
   0xc   : > { %s292_s18 = sshll.u32 %s2134_s17, 4  ;;  %p1616_p0 = scmp.ge.s32.totalorder %s2132_s16, 1  ;;  %s2232_s18 = int_to_ptr.vmem [resolvable:$true] %s292_s18 }
   0xd   : > { %p2625_p1 = scmp.eq.s32.totalorder %s2227_s19, 0  ;;  %p280_p2 = scmp.lt.s32.totalorder %s2132_s16, 3 }
   0xe   : > { %s2135_s21 = smov [#allocation9]   ;;  %s2136_s24 = smov [#allocation8]  }
   0xf   : > { %p2234_p3 = pnand %p1616_p0, %p280_p2  ;;  %s324_s22 = sshll.u32 %s2135_s21, 4  ;;  %s2247_s22 = int_to_ptr.vmem [resolvable:$true] %s324_s22 }
  0x10   : > { %s308_s25 = sshll.u32 %s2136_s24, 4  ;;  %s2633_s1 = sld [smem:[#allocation17_spill]]  ;;  %s2249_s25 = int_to_ptr.vmem [resolvable:$true] %s308_s25 }
  0x11   : > { %s2631_s20 = scalar_select %p2234_p3, 1, 0 }
  0x12   : > { %p1822_p5 = pneg %p2234_p3 }
  0x14   : > { %p2243_p6 = pnand %p1822_p5, %p2625_p1 }
  0x16   : > { %s1916_s28 = scalar_lea.hbm %s2633_s1, 512  ;;  %p2259_p8 = pneg %p2243_p6 }
  0x17   : > { %p1917_p7 = scmp.ne.s32.totalorder %s2633_s1, %s1916_s28  ;;  %p1923_p11 = scmp.lt.u32.totalorder %s1916_s28, %s2633_s1 }
  0x19   : > { %p1919_p9 = pnand %p2259_p8, %p1917_p7 }
  0x1b   : > { %p1920_p10 = pneg %p1919_p9 }
  0x1d   : > { %p1925_p12 = pnand %p1923_p11, %p1920_p10 }
  0x1f   : > { %1928 = shalt.err (!%p1925_p12)
}
  0x20   : > { %s1929_s21 = scalar_lea.vmem %s2232_s18, 512  ;;  %p1937_p5 = scmp.lt.s32.totalorder %s2232_s18, %s2232_s18 }
  0x21   : > { %p1930_p13 = scmp.ne.s32.totalorder %s2232_s18, %s1929_s21  ;;  %p1938_p4 = scmp.lt.s32.totalorder %s1929_s21, %s1929_s21 }
  0x23   : > { %p1932_p0 = pnand %p1930_p13, %p2259_p8  ;;  %p1939_p7 = por %p1938_p4, %p1937_p5 }
  0x25   : > { %p1933_p2 = pneg %p1932_p0 }
  0x27   : > { %p1940_p9 = pnand %p1939_p7, %p1933_p2 }
  0x29   : > { %1943 = shalt.err (!%p1940_p9)
}
  0x2a   : > { %s2137_s24 = smov 128   ;;  %s2138_s26 = smov 8  }
  0x2b   : > { %1825 = dma.hbm_to_vmem [thread:$0]  (!%p2243_p6), %s2633_s1, 512, %s2232_s18, [#allocation7], %s2137_s24, %s2137_s24, %s2138_s26  }
  0x2c   : > { %s1944_s12 = scalar_lea.hbm %s2618_s5, 512 }
  0x2d   : > { %p1945_p4 = scmp.ne.s32.totalorder %s2618_s5, %s1944_s12  ;;  %p1951_p12 = scmp.lt.u32.totalorder %s1944_s12, %s2618_s5 }
  0x2f   : > { %p1947_p10 = pnand %p1945_p4, %p2259_p8 }
  0x31   : > { %p1948_p11 = pneg %p1947_p10 }
  0x33   : > { %p1953_p13 = pnand %p1951_p12, %p1948_p11 }
  0x35   : > { %1956 = shalt.err (!%p1953_p13)
}
  0x36   : > { %s1957_s18 = scalar_lea.vmem %s2247_s22, 512  ;;  %p1965_p7 = scmp.lt.s32.totalorder %s2247_s22, %s2247_s22 }
  0x37   : > { %p1958_p0 = scmp.ne.s32.totalorder %s2247_s22, %s1957_s18  ;;  %p1966_p9 = scmp.lt.s32.totalorder %s1957_s18, %s1957_s18 }
  0x39   : > { %p1960_p2 = pnand %p1958_p0, %p2259_p8  ;;  %p1967_p4 = por %p1966_p9, %p1965_p7 }
  0x3b   : > { %p1961_p5 = pneg %p1960_p2 }
  0x3d   : > { %p1968_p10 = pnand %p1967_p4, %p1961_p5 }
  0x3f   : > { %1971 = shalt.err (!%p1968_p10)
}
  0x40   : > { %1831 = dma.hbm_to_vmem [thread:$0]  (!%p2243_p6), %s2618_s5, 512, %s2247_s22, [#allocation10], %s2137_s24, %s2137_s24, %s2138_s26  }
  0x41   : > { %s1972_s29 = scalar_lea.hbm %s2616_s3, 512 }
  0x42   : > { %p1973_p11 = scmp.ne.s32.totalorder %s2616_s3, %s1972_s29  ;;  %p1979_p0 = scmp.lt.u32.totalorder %s1972_s29, %s2616_s3 }
  0x44   : > { %p1975_p12 = pnand %p1973_p11, %p2259_p8 }
  0x46   : > { %p1976_p13 = pneg %p1975_p12 }
  0x48   : > { %p1981_p2 = pnand %p1979_p0, %p1976_p13 }
  0x4a   : > { %1984 = shalt.err (!%p1981_p2)
}
  0x4b   : > { %s1985_s22 = scalar_lea.vmem %s2249_s25, 512  ;;  %p1993_p4 = scmp.lt.s32.totalorder %s2249_s25, %s2249_s25 }
  0x4c   : > { %p1986_p5 = scmp.ne.s32.totalorder %s2249_s25, %s1985_s22  ;;  %p1994_p10 = scmp.lt.s32.totalorder %s1985_s22, %s1985_s22 }
  0x4e   : > { %p1988_p7 = pnand %p1986_p5, %p2259_p8  ;;  %p1995_p11 = por %p1994_p10, %p1993_p4 }
  0x50   : > { %p1989_p9 = pneg %p1988_p7 }
  0x52   : > { %p1996_p12 = pnand %p1995_p11, %p1989_p9 }
  0x54   : > { %1999 = shalt.err (!%p1996_p12)
}
  0x55   : > { %1828 = dma.hbm_to_vmem [thread:$0]  (!%p2243_p6), %s2616_s3, 512, %s2249_s25, [#allocation7], %s2137_s24, %s2137_s24, %s2138_s26  }
  0x56   : > { %s2139_s9 = smov [#allocation11]   ;;  %s2000_s30 = scalar_lea.hbm %s2620_s7, 512 }
  0x57   : > { %s340_s27 = sshll.u32 %s2139_s9, 4  ;;  %p2001_p13 = scmp.ne.s32.totalorder %s2620_s7, %s2000_s30  ;;  %s341_s27 = int_to_ptr.vmem [resolvable:$true] %s340_s27 }
  0x58   : > { %p2007_p5 = scmp.lt.u32.totalorder %s2000_s30, %s2620_s7 }
  0x59   : > { %p2003_p0 = pnand %p2001_p13, %p2259_p8 }
  0x5b   : > { %p2004_p2 = pneg %p2003_p0 }
  0x5d   : > { %p2009_p7 = pnand %p2007_p5, %p2004_p2 }
  0x5f   : > { %2012 = shalt.err (!%p2009_p7)
}
  0x60   : > { %s2013_s25 = scalar_lea.vmem %s341_s27, 512  ;;  %p2021_p11 = scmp.lt.s32.totalorder %s341_s27, %s341_s27 }
  0x61   : > { %p2014_p9 = scmp.ne.s32.totalorder %s341_s27, %s2013_s25  ;;  %p2022_p12 = scmp.lt.s32.totalorder %s2013_s25, %s2013_s25 }
  0x63   : > { %p2016_p4 = pnand %p2014_p9, %p2259_p8  ;;  %p2023_p1 = por %p2022_p12, %p2021_p11 }
  0x65   : > { %p2017_p10 = pneg %p2016_p4 }
  0x67   : > { %p2024_p3 = pnand %p2023_p1, %p2017_p10 }
  0x69   : > { %2027 = shalt.err (!%p2024_p3)
}
  0x6a   : > { %1834 = dma.hbm_to_vmem [thread:$0]  (!%p2243_p6), %s2620_s7, 512, %s341_s27, [#allocation10], %s2137_s24, %s2137_s24, %s2138_s26  }
  0x6b   : > { %s1615_s23 = sadd.s32 4294967294, %s2132_s16   ;;  %s2358_s11 = sadd.s32 1, %s2132_s16  }
  0x6c   : > { %s33_s9 = ssub.s32 %s2132_s16, %s2358_s11  ;;  %s36_s28 = sadd.s32 1, %s2128_s15 }
  0x6d   : > { %p34_p1 = scmp.eq.s32.totalorder %s33_s9, 0  ;;  %p43_p3 = scmp.ne.s32.totalorder %s2128_s15, %s2124_s14 }
  0x6e   : > { %p44_p8 = scmp.eq.s32.totalorder %s2132_s16, 0  ;;  %p49_p13 = scmp.ne.s32.totalorder %s2124_s14, %s2120_s13 }
  0x6f   : > { %s2369_s29 = scalar_select %p34_p1, %s2128_s15, %s36_s28  }
  0x70   : > { %p2371_p0 = por %p44_p8, %p43_p3  ;;  %p2636_p2 = scmp.eq.s32.totalorder %s2227_s19, 0 }
  0x71   : > { %p241_p5 = scmp.eq.s32.totalorder %s2227_s19, 1  ;;  %p247_p7 = scmp.eq.s32.totalorder %s1615_s23, 1 }
  0x72   : > { %p2377_p6 = por %p2636_p2, %p49_p13  ;;  %p1847_p9 = scmp.lt.s32.totalorder %s2132_s16, 2 }
  0x73   : > { %s357_s26 = sand.u32 1, %s2128_s15   ;;  %p2384_p4 = por %p241_p5, %p43_p3 }
  0x74   : > { %p2388_p10 = por %p247_p7, %p49_p13  ;;  %s1622_s17 = sshll.u32 %s357_s26, 3 }
  0x75   : > { %s2638_s27 = scalar_select %p2384_p4, 1, 0 }
  0x76   : > { %s2639_s12 = scalar_select %p2388_p10, 1, 0 }
  0x77   : > { %s1623_s21 = sshll.u32 %s2132_s16, 7  ;;  %s361_s8 = scalar_lea.vmem [#allocation3], %s1622_s17 }
  0x78   : > { %s2396_s18 = scalar_lea.hbm %s2613_s0, %s1623_s21  ;;  %s368_s23 = sshll.u32 %s361_s8, 4  ;;  %s2398_s23 = int_to_ptr.vmem [resolvable:$true] %s368_s23 }
  0x79   : > { %p2402_p11 = pnand %p1847_p9, %p2371_p0  ;;  %s358_s28 = scalar_lea.sflag [#allocation4], %s357_s26 }
  0x7a   : > { %s2028_s1 = scalar_lea.hbm %s2396_s18, 128  ;;  %s2033_s22 = scalar_lea.hbm %s2613_s0, 256 }
  0x7b   : > { %p2029_p12 = scmp.ne.s32.totalorder %s2396_s18, %s2028_s1  ;;  %p2030_p1 = pneg %p2402_p11 }
  0x7c   : > { %p2034_p13 = scmp.lt.u32.totalorder %s2396_s18, %s2613_s0  ;;  %p2035_p0 = scmp.lt.u32.totalorder %s2033_s22, %s2028_s1 }
  0x7d   : > { %p2031_p3 = pnand %p2030_p1, %p2029_p12  ;;  %p2037_p5 = scmp.lt.u32.totalorder %s2028_s1, %s2396_s18 }
  0x7e   : > { %p2036_p2 = por %p2035_p0, %p2034_p13 }
  0x7f   : > { %p2032_p8 = pneg %p2031_p3 }
  0x80   : > { %p2038_p7 = por %p2037_p5, %p2036_p2 }
  0x82   : > { %p2039_p9 = pnand %p2038_p7, %p2032_p8 }
  0x84   : > { %2042 = shalt.err (!%p2039_p9)
}
  0x85   : > { %s2043_s26 = scalar_lea.vmem %s2398_s23, 128  ;;  %s2140_s8 = smov [#allocation3]  }
  0x86   : > { %p2044_p12 = scmp.ne.s32.totalorder %s2398_s23, %s2043_s26  ;;  %s2048_s17 = sshll.u32 %s2140_s8, 4  ;;  %s2049_s17 = int_to_ptr.vmem [resolvable:$false] %s2048_s17 }
  0x87   : > { %s2050_s21 = scalar_lea.vmem %s2049_s17, 256  ;;  %p2051_p4 = scmp.lt.s32.totalorder %s2398_s23, %s2049_s17 }
  0x88   : > { %p2046_p3 = pnand %p2044_p12, %p2030_p1  ;;  %p2052_p13 = scmp.lt.s32.totalorder %s2050_s21, %s2043_s26 }
  0x8a   : > { %p2047_p10 = pneg %p2046_p3  ;;  %p2053_p0 = por %p2052_p13, %p2051_p4 }
  0x8c   : > { %p2054_p2 = pnand %p2053_p0, %p2047_p10 }
  0x8e   : > { %2057 = shalt.err (!%p2054_p2)
}
  0x8f   : > { %1838 = dma.hbm_to_vmem [thread:$0]  (!%p2402_p11), %s2396_s18, 128, %s2398_s23, %s358_s28  }
  0x90   : > { %p2641_p8 = scmp.ne.s32.totalorder %s2631_s20, 0 }
  0x91   : > { %s2434_s1 = sand.u32 (!%p2641_p8), 1, %s2124_s14  }
  0x92   : > { %377 = sbr.rel (%p2641_p8) target bundleno = 2071 (0x817), region = 56  ;;  %s1625_s22 = sshll.u32 (!%p2641_p8), %s2434_s1, 3 }
  0x93   : > { %s380_s30 = scalar_lea.sflag (!%p2641_p8), [#allocation4], %s2434_s1  ;;  %s2440_s25 = scalar_lea.vmem (!%p2641_p8), [#allocation3], %s1625_s22 }
  0x99   : > { %2103 = dma.done.wait (%p2377_p6), %s380_s30, 128  }
  0x9a   : > { %2105 = vsyncadd (%p2377_p6), %s380_s30, 4294967168  ;;  %p2642_p4 = scmp.eq.s32.totalorder %s2227_s19, 0 }
  0x9c   : > { %2107 = dma.done.wait (%p2642_p4), [#allocation7], 1024   ;;  %p2643_p10 = pmov %p2642_p4 }
  0x9d   : > { %p2644_p11 = pmov %p2642_p4 }
  0x9e   : > { %2109 = vsyncadd (%p2643_p10), [#allocation7], 4294966272 }
  0x9f   : > { %2111 = dma.done.wait (%p2644_p11), [#allocation10], 1024   ;;  %p2645_p1 = pmov %p2642_p4 }
  0xa0   : > { %v2141_v0 = vmov 0.0|0.0   ;;  %vm2142_vm0 = vmmov 0   ;;  %v2143_v1 = vmov 0.0   ;;  %v532_v2 = vld [vmem:[#allocation8] sm:$0xff]  ;;  %v533_v3 = vld [vmem:[#allocation8 + $0x8] sm:$0xff]  ;;  %v534_v7 = vld [vmem:[#allocation8 + $0x10] sm:$0xff] }
  0xa1   : > { %2113 = vsyncadd (%p2645_p1), [#allocation10], 4294966272  ;;  %1784 = vmatprep.subr.bf16.mxu1 %v2141_v0  ;;  %1778 = vmatprep.subr.bf16.mxu0 %v2141_v0  ;;  %v447_v4 = vld [vmem:[#allocation6] sm:$0xff]  ;;  %v1785_v5 = vpack.c.bf16 %v533_v3, %v532_v2  ;;  %v448_v6 = vld [vmem:[#allocation6 + $0x8] sm:$0xff]  ;;  %vm458_vm1 = vcmask 261120   ;;  %vm694_vm2 = vcmask 64512  }
  0xa2   : > { %1713 = vmatprep.mubr.msk.f32.mxu1 %vm2142_vm0, %v2143_v1  ;;  %1702 = vmatprep.mubr.msk.f32.mxu0 %vm2142_vm0, %v2143_v1  ;;  %v535_v8 = vld [vmem:[#allocation8 + $0x18] sm:$0xff]  ;;  %v1779_v9 = vpack.c.bf16 %v448_v6, %v447_v4  ;;  %v449_v10 = vld [vmem:[#allocation6 + $0x10] sm:$0xff]  ;;  %v1635_v15 = vld [vmem:[%s2617_s4] ss:$0 sm:$0xff]  ;;  %s2144_s9 = smov 120   ;;  %s2145_s28 = smov 112  }
  0xa3   : > { %v450_v11 = vld [vmem:[#allocation6 + $0x18] sm:$0xff]  ;;  %1786 = vmatpush3.bf16.msra.mxu1 %v1785_v5  ;;  %v1788_v12 = vpack.c.bf16 %v535_v8, %v534_v7  ;;  %v1633_v16 = vld [vmem:[%s2615_s2] ss:$0 sm:$0xff]  ;;  %s2146_s26 = smov 104   ;;  %v613_v23 = vld [vmem:[#allocation9] sm:$0xff]  ;;  %p441_p6 = scmp.lt.s32.totalorder %s2227_s19, 1 }
  0xa4   : > { %1780 = vmatpush3.bf16.msra.mxu0 %v1779_v9  ;;  %1787 = vmatprep.subr.bf16.mxu1 %v2141_v0  ;;  %v1782_v13 = vpack.c.bf16 %v450_v11, %v449_v10  ;;  %v446_v14 = vld [vmem:[%s2440_s25] sm:$0xff]  ;;  %v614_v24 = vld [vmem:[#allocation9 + $0x8] sm:$0xff]  ;;  %s2147_s18 = smov 8   ;;  %s2148_s23 = smov 16   ;;  %vm1028_vm3 = vcmask 130112   ;;  %vm1200_vm4 = vcmask 195712  }
  0xa5   : > { %1781 = vmatprep.subr.bf16.mxu0 %v2141_v0  ;;  %v615_v25 = vld [vmem:[#allocation9 + $0x10] sm:$0xff]  ;;  %v1791_v26 = vpack.c.bf16 %v614_v24, %v613_v23  ;;  %v616_v27 = vld [vmem:[#allocation9 + $0x18] sm:$0xff]  ;;  %v1637_v37 = vld [vmem:[%s2619_s6] ss:$0 sm:$0xff]  ;;  %s442_s21 = scalar_select %p441_p6, %s2227_s19, 1  ;;  %vm1372_vm5 = vcmask 261312  }
  0xa6   : > { %v1794_v28 = vpack.c.bf16 %v616_v27, %v615_v25  ;;  %v1376_v27 = vld [vmem:[#allocation11 + $0x8] sm:$0xff]  ;;  %s2646_s8 = sld [smem:[#allocation18_spill]]  ;;  %s1654_s17 = sshll.u32 %s2227_s19, 7 }
  0xa7   : > { %1789 = vmatpush3.bf16.msra.mxu1 %v1788_v12  ;;  %s1657_s30 = sshll.u32 %s442_s21, 5  ;;  %s433_s21 = scalar_lea.vmem [#allocation12], %s1625_s22 }
  0xa8   : > { %1783 = vmatpush3.bf16.msra.mxu0 %v1782_v13  ;;  %1727 = vmatprep.subr.mxu1 %v2143_v1  ;;  %s2514_s24 = scalar_lea.vmem %s2623_s10, %s1657_s30  ;;  %s1479_s30 = sshll.u32 %s433_s21, 4  ;;  %s2570_s30 = int_to_ptr.vmem [resolvable:$true] %s1479_s30 }
  0xa9   : > { %1790 = vmatprep.subr.bf16.mxu0 %v2141_v0  ;;  %s2058_s19 = scalar_lea.vmem %s2570_s30, 128  ;;  %p2648_p7 = scmp.ne.s32.totalorder %s2638_s27, 0 }
  0xaa   : > { %1714 = vmatmul.mubr.msk.f32.vlgmr.msra.gmra.mrb[0].mxu1 %vm458_vm1, %v446_v14  ;;  %p2059_p5 = scmp.ne.s32.totalorder %s2570_s30, %s2058_s19  ;;  %s2150_s22 = smov [#allocation12]  }
  0xab   : > { %1703 = vmatmul.mubr.msk.f32.vlgmr.msra.gmra.mrb[0].mxu0 %vm458_vm1, %v446_v14  ;;  %1729 = vmatprep.mubr.msk.f32.mxu1 %vm2142_vm0, %v2143_v1 }
  0xac   : > { %1724 = vmatprep.mubr.msk.f32.mxu0 %vm2142_vm0, %v2143_v1  ;;  %1792 = vmatpush3.bf16.msra.mxu0 %v1791_v26  ;;  %v1375_v26 = vld [vmem:[#allocation11] sm:$0xff]  ;;  %p2060_p9 = pnand %p2059_p5, %p2648_p7 }
  0xad   : > { %1793 = vmatprep.subr.bf16.mxu0 %v2141_v0 }
  0xae   : > { %p2061_p12 = pneg %p2060_p9 }
  0xb0   : > { %1795 = vmatpush3.bf16.msra.mxu0 %v1794_v28  ;;  %v1797_v28 = vpack.c.bf16 %v1376_v27, %v1375_v26 }
  0xb1   : > { %1747 = vmatprep.subr.mxu0 %v2143_v1 }
  0xb3   : > { %1725 = vmatmul.mubr.msk.f32.vlgmr.msra.gmra.mrb[2].mxu0 %vm458_vm1, %v446_v14 }
  0xb4   : > { %1749 = vmatprep.mubr.msk.f32.mxu0 %vm2142_vm0, %v2143_v1 }
 0x17d   : > { %v609_v17 = vpop.f32.mrb[0].mxu1 }
 0x17e   : > { %v610_v18 = vadd.f32 %v1635_v15, %v609_v17  ;;  %v1715_v19 = vpop.f32.mrb[1].mxu1  ;;  %v528_v20 = vpop.f32.mrb[0].mxu0 }
 0x17f   : > { %v529_v21 = vadd.f32 %v1633_v16, %v528_v20  ;;  %v1704_v22 = vpop.f32.mrb[1].mxu0 }
 0x180   : > { %859 = vrot.lane.b32.xlu1 %v610_v18, %s2144_s9  ;;  %1728 = vmatpush3.xpose.msk.msra.mxu1 %vm694_vm2, %v610_v18 }
 0x181   : > { %1732 = vmatprep.subr.mxu1 %v2143_v1 }
 0x183   : > { %1730 = vmatmul.mubr.msk.f32.vlgmr.msra.gmra.mrb[2].mxu1 %vm694_vm2, %v529_v21 }
 0x184   : > { %857 = vrot.lane.b32.xlu1 %v529_v21, %s2144_s9  ;;  %1734 = vmatprep.mubr.msk.f32.mxu1 %vm2142_vm0, %v2143_v1 }
 0x186   : > { %v690_v38 = vpop.f32.mrb[2].mxu0 }
 0x187   : > { %v2497_v39 = vadd.f32 %v1637_v37, %v690_v38  ;;  %v1726_v40 = vpop.f32.mrb[3].mxu0 }
 0x188   : > { %1030 = vrot.lane.b32.xlu1 %v529_v21, %s2145_s28  ;;  %v1651_v40 = vld [vmem:[%s2646_s8] ss:$0 sm:$0xff] }
 0x189   : > { %1733 = vmatpush3.msra.mxu1 %v2497_v39 }
 0x18a   : > { %1737 = vmatprep.subr.mxu1 %v2143_v1 }
 0x18c   : > { %1204 = vrot.lane.b32.xlu1 %v610_v18, %s2146_s26 }
 0x190   : > { %1202 = vrot.lane.b32.xlu1 %v529_v21, %s2146_s26 }
 0x1f2   : > { %v860_v41 = vpop.permute.xlu1 %859 }
 0x1f6   : > { %v858_v42 = vpop.permute.xlu1 %857 }
 0x1fa   : > { %v1031_v43 = vpop.permute.xlu1 %1030 }
 0x1fe   : > { %v1205_v46 = vpop.permute.xlu1 %1204 }
 0x202   : > { %v1203_v48 = vpop.permute.xlu1 %1202 }
 0x256   : > { %v767_v29 = vpop.f32.mrb[2].mxu1 }
 0x257   : > { %v1731_v30 = vpop.f32.mrb[3].mxu1  ;;  %v771_v31 = vsel %vm694_vm2, %v767_v29, -inf }
 0x258   : > { %772 = vmax.xlane.f32.xlu0 %v771_v31  ;;  %v1378_v30 = vld [vmem:[#allocation11 + $0x18] sm:$0xff] }
 0x2e5   : > { %v773_v32 = vpop.xlane.xlu0 %772 }
 0x2e6   : > { %v774_v33 = vsub.f32 %v767_v29, %v773_v32  ;;  %v1377_v29 = vld [vmem:[#allocation11 + $0x10] sm:$0xff] }
 0x2e7   : > { %v1800_v31 = vpack.c.bf16 %v1378_v30, %v1377_v29 }
 0x2e8   : > { %v775_v34 = vmul.f32 1.442695, %v774_v33 }
 0x2ea   : > { %1900 = vpow2.f32 %v775_v34 }
 0x2f4   : > { %v1901_v35 = vpop.eup %1900 }
 0x2f5   : > { %v777_v36 = vsel %vm694_vm2, %v1901_v35, 0.0 }
 0x2f6   : > { %778 = vadd.xlane.f32.xlu0 %v777_v36 }
 0x30c   : > { %1032 = vrot.lane.b32.xlu0 %v610_v18, %s2145_s28 }
 0x383   : > { %v779_v44 = vpop.xlane.xlu0 %778 }
 0x384   : > { %1902 = vrcp.f32 %v779_v44 }
 0x387   : > { %v1033_v45 = vpop.permute.xlu0 %1032 }
 0x388   : > { %1748 = vmatpush3.xpose.msk.msra.mxu0 %vm694_vm2, %v1033_v45 }
 0x389   : > { %1757 = vmatprep.subr.mxu0 %v2143_v1 }
 0x38b   : > { %1750 = vmatmul.mubr.msk.f32.vlgmr.msra.gmra.mrb[4].mxu0 %vm694_vm2, %v1031_v43 }
 0x38c   : > { %1758 = vmatpush3.xpose.msk.msra.mxu0 %vm694_vm2, %v1205_v46  ;;  %1759 = vmatprep.mubr.msk.f32.mxu0 %vm2142_vm0, %v2143_v1 }
 0x38d   : > { %1796 = vmatprep.subr.bf16.mxu0 %v2141_v0 }
 0x38e   : > { %v1903_v47 = vpop.eup %1902 }
 0x38f   : > { %v781_v49 = vmul.f32 %v1903_v47, %v1901_v35  ;;  %1760 = vmatmul.mubr.msk.f32.vlgmr.msra.gmra.mrb[6].mxu0 %vm694_vm2, %v1203_v48 }
 0x390   : > { %1775 = vmatprep.mubr.msk.f32.mxu0 %vm2142_vm0, %v2143_v1  ;;  %1798 = vmatpush3.bf16.msra.mxu0 %v1797_v28 }
 0x391   : > { %782 = vst.msk [vmem:[%s2514_s24] sm:$0xff] %vm694_vm2, %v781_v49  ;;  %1735 = vmatmul.mubr.msk.f32.vlgmr.msra.gmra.mrb[4].mxu1 %vm694_vm2, %v781_v49  ;;  %1799 = vmatprep.subr.bf16.mxu0 %v2141_v0 }
 0x392   : > { %1738 = vmatpush3.xpose.msk.msra.mxu1 %vm694_vm2, %v860_v41  ;;  %1739 = vmatprep.mubr.msk.f32.mxu1 %vm2142_vm0, %v2143_v1 }
 0x393   : > { %1742 = vmatprep.subr.mxu1 %v2143_v1 }
 0x394   : > { %1801 = vmatpush3.bf16.msra.mxu0 %v1800_v31 }
 0x395   : > { %1740 = vmatmul.mubr.msk.f32.vlgmr.msra.gmra.mrb[6].mxu1 %vm694_vm2, %v858_v42 }
 0x396   : > { %1744 = vmatprep.mubr.msk.f32.mxu1 %vm2142_vm0, %v2143_v1 }
 0x45e   : > { %v1104_v50 = vpop.f32.mrb[4].mxu0 }
 0x45f   : > { %v1751_v51 = vpop.f32.mrb[5].mxu0  ;;  %v1108_v52 = vsel %vm694_vm2, %v1104_v50, -inf }
 0x460   : > { %1109 = vmax.xlane.f32.xlu0 %v1108_v52 }
 0x462   : > { %v1276_v53 = vpop.f32.mrb[6].mxu0 }
 0x463   : > { %v1761_v54 = vpop.f32.mrb[7].mxu0  ;;  %v1280_v60 = vsel %vm694_vm2, %v1276_v53, -inf }
 0x464   : > { %v852_v55 = vpop.f32.mrb[4].mxu1 }
 0x465   : > { %856 = vst.msk [vmem:[#allocation2] sm:$0xff] %vm694_vm2, %v852_v55  ;;  %v1736_v56 = vpop.f32.mrb[5].mxu1 }
 0x468   : > { %v931_v57 = vpop.f32.mrb[6].mxu1 }
 0x469   : > { %v1741_v58 = vpop.f32.mrb[7].mxu1  ;;  %v935_v59 = vsel %vm694_vm2, %v931_v57, -inf }
 0x46a   : > { %936 = vmax.xlane.f32.xlu1 %v935_v59 }
 0x46e   : > { %1281 = vmax.xlane.f32.xlu1 %v1280_v60 }
 0x4ed   : > { %v1110_v61 = vpop.xlane.xlu0 %1109 }
 0x4ee   : > { %v1111_v62 = vsub.f32 %v1104_v50, %v1110_v61 }
 0x4f0   : > { %v1112_v63 = vmul.f32 1.442695, %v1111_v62 }
 0x4f2   : > { %1904 = vpow2.f32 %v1112_v63 }
 0x4f7   : > { %v937_v2 = vpop.xlane.xlu1 %936 }
 0x4f8   : > { %v938_v10 = vsub.f32 %v931_v57, %v937_v2 }
 0x4fa   : > { %v939_v11 = vmul.f32 1.442695, %v938_v10 }
 0x4fb   : > { %v1282_v3 = vpop.xlane.xlu1 %1281 }
 0x4fc   : > { %v1905_v4 = vpop.eup %1904  ;;  %v1283_v5 = vsub.f32 %v1276_v53, %v1282_v3 }
 0x4fd   : > { %v1114_v6 = vsel %vm694_vm2, %v1905_v4, 0.0 }
 0x4fe   : > { %v1284_v7 = vmul.f32 1.442695, %v1283_v5  ;;  %1115 = vadd.xlane.f32.xlu0 %v1114_v6 }
 0x500   : > { %1906 = vpow2.f32 %v1284_v7 }
 0x501   : > { %1908 = vpow2.f32 %v939_v11 }
 0x50a   : > { %v1907_v8 = vpop.eup %1906 }
 0x50b   : > { %v1286_v9 = vsel %vm694_vm2, %v1907_v8, 0.0  ;;  %v1909_v12 = vpop.eup %1908 }
 0x50c   : > { %1287 = vadd.xlane.f32.xlu1 %v1286_v9  ;;  %v941_v13 = vsel %vm694_vm2, %v1909_v12, 0.0 }
 0x514   : > { %948 = vrot.lane.b32.xlu0 %v2497_v39, %s2144_s9  ;;  %s2149_s9 = smov 24  }
 0x51d   : > { %1120 = vrot.lane.b32.xlu1 %v2497_v39, %s2145_s28 }
 0x541   : > { %942 = vadd.xlane.f32.xlu1 %v941_v13 }
 0x552   : > { %1292 = vrot.lane.b32.xlu1 %v2497_v39, %s2146_s26 }
 0x58b   : > { %v1116_v14 = vpop.xlane.xlu0 %1115 }
 0x58c   : > { %1910 = vrcp.f32 %v1116_v14 }
 0x58f   : > { %v949_v15 = vpop.permute.xlu0 %948 }
 0x590   : > { %1743 = vmatpush3.msra.mxu1 %v949_v15 }
 0x591   : > { %1752 = vmatprep.subr.mxu1 %v2143_v1 }
 0x596   : > { %v1911_v16 = vpop.eup %1910 }
 0x597   : > { %v1118_v17 = vmul.f32 %v1911_v16, %v1905_v4 }
 0x599   : > { %1119 = vst.msk [vmem:[%s2514_s24 + $0x10] sm:$0xff] %vm694_vm2, %v1118_v17  ;;  %v1288_v18 = vpop.xlane.xlu1 %1287 }
 0x59a   : > { %1912 = vrcp.f32 %v1288_v18 }
 0x59d   : > { %v1121_v21 = vpop.permute.xlu1 %1120 }
 0x5a4   : > { %v1913_v19 = vpop.eup %1912 }
 0x5a5   : > { %v1290_v20 = vmul.f32 %v1913_v19, %v1907_v8 }
 0x5a7   : > { %1291 = vst.msk [vmem:[%s2514_s24 + $0x18] sm:$0xff] %vm694_vm2, %v1290_v20 }
 0x5ce   : > { %v943_v22 = vpop.xlane.xlu1 %942 }
 0x5cf   : > { %1914 = vrcp.f32 %v943_v22 }
 0x5d2   : > { %v1293_v25 = vpop.permute.xlu1 %1292 }
 0x5d9   : > { %v1915_v23 = vpop.eup %1914 }
 0x5da   : > { %v945_v24 = vmul.f32 %v1915_v23, %v1909_v12 }
 0x5dc   : > { %946 = vst.msk [vmem:[%s2514_s24 + $0x8] sm:$0xff] %vm694_vm2, %v945_v24  ;;  %1745 = vmatmul.mubr.msk.f32.vlgmr.msra.gmra.mrb[8].mxu1 %vm694_vm2, %v945_v24  ;;  %s2647_s24 = sld [smem:[#allocation19_spill]] }
 0x5dd   : > { %1753 = vmatpush3.msra.mxu1 %v1121_v21  ;;  %1754 = vmatprep.mubr.msk.f32.mxu1 %vm2142_vm0, %v2143_v1 }
 0x5de   : > { %1762 = vmatprep.subr.mxu1 %v2143_v1 }
 0x5e0   : > { %1755 = vmatmul.mubr.msk.f32.vlgmr.msra.gmra.mrb[10].mxu1 %vm694_vm2, %v1118_v17 }
 0x5e1   : > { %1763 = vmatpush3.msra.mxu1 %v1293_v25  ;;  %1764 = vmatprep.mubr.msk.f32.mxu1 %vm2142_vm0, %v2143_v1 }
 0x5e4   : > { %1765 = vmatmul.mubr.msk.f32.vlgmr.msra.gmra.mrb[12].mxu1 %vm694_vm2, %v1290_v20 }
 0x6af   : > { %v1020_v32 = vpop.f32.mrb[8].mxu1 }
 0x6b0   : > { %1025 = vrot.lane.b32.xlu0 %v1020_v32, %s2147_s18  ;;  %v1746_v33 = vpop.f32.mrb[9].mxu1  ;;  %s2568_s18 = scalar_lea.hbm %s2647_s24, %s1654_s17 }
 0x6b3   : > { %v1192_v34 = vpop.f32.mrb[10].mxu1 }
 0x6b4   : > { %1197 = vrot.lane.b32.xlu1 %v1192_v34, %s2148_s23  ;;  %v1756_v1 = vpop.f32.mrb[11].mxu1  ;;  %s1461_s23 = scalar_lea.sflag [#allocation5], %s2434_s1 }
 0x6b7   : > { %v1364_v35 = vpop.f32.mrb[12].mxu1 }
 0x6b8   : > { %1369 = vrot.lane.b32.xlu0 %v1364_v35, %s2149_s9  ;;  %v1766_v36 = vpop.f32.mrb[13].mxu1  ;;  %s2062_s9 = sshll.u32 %s2150_s22, 4  ;;  %s2063_s9 = int_to_ptr.vmem [resolvable:$false] %s2062_s9 }
 0x6b9   : > { %s2064_s28 = scalar_lea.vmem %s2063_s9, 256  ;;  %p2065_p3 = scmp.lt.s32.totalorder %s2570_s30, %s2063_s9 }
 0x6ba   : > { %p2066_p13 = scmp.lt.s32.totalorder %s2064_s28, %s2058_s19 }
 0x6bc   : > { %p2067_p0 = por %p2066_p13, %p2065_p3 }
 0x6be   : > { %p2068_p2 = pnand %p2067_p0, %p2061_p12 }
 0x722   : > { %v1026_v37 = vpop.permute.xlu0 %1025 }
 0x723   : > { %1029 = vst.msk [vmem:[#allocation2] sm:$0xff] %vm1028_vm3, %v1026_v37 }
 0x726   : > { %v1198_v0 = vpop.permute.xlu1 %1197 }
 0x727   : > { %1201 = vst.msk [vmem:[#allocation2] sm:$0xff] %vm1200_vm4, %v1198_v0 }
 0x72a   : > { %v1370_v38 = vpop.permute.xlu0 %1369 }
 0x72b   : > { %1373 = vst.msk [vmem:[#allocation2] sm:$0xff] %vm1372_vm5, %v1370_v38 }
 0x732   : > { %v1374_v39 = vld [vmem:[#allocation2] sm:$0xff] }
 0x733   : > { %1776 = vmatmul.mubr.msk.f32.vlgmr.msra.gmra.mrb[8].mxu0 %vm458_vm1, %v1374_v39 }
 0x806   : > { %v1455_v41 = vpop.f32.mrb[8].mxu0 }
 0x807   : > { %v1456_v42 = vadd.f32 %v1651_v40, %v1455_v41  ;;  %v1777_v43 = vpop.f32.mrb[9].mxu0 }
 0x809   : > { %1459 = vst.msk [vmem:[%s433_s21] sm:$0xff] %vm458_vm1, %v1456_v42 }
 0x80a   : > { %2071 = shalt.err (!%p2068_p2)
}
 0x80b   : > { %s2072_s1 = scalar_lea.hbm %s2568_s18, 128  ;;  %s2076_s17 = scalar_lea.hbm %s2647_s24, 256 }
 0x80c   : > { %p2073_p8 = scmp.ne.s32.totalorder %s2568_s18, %s2072_s1  ;;  %p2077_p11 = scmp.lt.u32.totalorder %s2568_s18, %s2647_s24 }
 0x80d   : > { %p2078_p1 = scmp.lt.u32.totalorder %s2076_s17, %s2072_s1  ;;  %p2080_p5 = scmp.lt.u32.totalorder %s2072_s1, %s2568_s18 }
 0x80e   : > { %p2074_p4 = pnand %p2073_p8, %p2648_p7 }
 0x80f   : > { %p2079_p6 = por %p2078_p1, %p2077_p11 }
 0x810   : > { %p2075_p10 = pneg %p2074_p4 }
 0x811   : > { %p2081_p9 = por %p2080_p5, %p2079_p6 }
 0x813   : > { %p2082_p12 = pnand %p2081_p9, %p2075_p10 }
 0x815   : > { %2085 = shalt.err (!%p2082_p12)
}
 0x816   : > { %1820 = dma.vmem_to_hbm [thread:$0]  (%p2648_p7), %s2570_s30, 128, %s2568_s18, %s1461_s23  }
 0x817 PF: > { %s1494_s20 = sand.u32 1, %s2120_s13   ;;  %p2649_p3 = scmp.ne.s32.totalorder %s2639_s12, 0 }
 0x818   : > { %p2650_p13 = scmp.ge.s32.totalorder %s2132_s16, 2  ;;  %s1495_s19 = scalar_lea.sflag [#allocation5], %s1494_s20 }
 0x81a   : > { %p1840_p0 = pnand %p2650_p13, %p2649_p3 }
 0x81c   : > { %2115 = dma.done.wait (!%p1840_p0), %s1495_s19, 128  }
 0x81d   : > { %2117 = vsyncadd (!%p1840_p0), %s1495_s19, 4294967168  ;;  %p26_p2 = scmp.ge.s32.totalorder %s2358_s11, 4   ;;  %s2651_s13 = smov %s2124_s14 }
 0x81e   : > { %s2652_s14 = smov %s2128_s15  ;;  %s2653_s15 = smov %s2369_s29 }
 0x81f   : > { %s2654_s16 = smov %s2358_s11  ;;  %28 = sbr.rel (!%p26_p2) target bundleno = 11 (0xb), region = 129 }
 0x826   :  { %1508 = vsyncpa [#allocation4], 1 }
 0x827   :  { %1510 = vsyncpa [#allocation4 + $0x1], 1 }
 0x828   :  { %1511 = vsyncpa [#allocation7], 1 }
 0x829   :  { %1512 = vsyncpa [#allocation10], 1 }
 0x82a   :  { %1513 = vsyncpa [#allocation5], 1 }
 0x82b   :  { %1515 = vsyncpa [#allocation5 + $0x1], 1 }

</bundles_post_ra>
